<compile_context>
chip_gen: v7x
topology: tpu7x:2x2x1
jax: 0.10.0
libtpu: 0.0.40
codegen_flags: <defaults>
</compile_context>

<pallas_src>
import functools

import numpy as np
import jax
import jax.numpy as jnp
from jax import lax
from jax.experimental import pallas as pl
from jax.experimental.pallas import tpu as pltpu


# ----------------------------------------------------------------------------
# Host-side constants -- all LINEAR in the spatial size (tiny).
# ----------------------------------------------------------------------------
def _row_scatter_constants(W, Wp):
    """Per-row constants for the stride-2 transpose-conv interleave.

    S[k, w, dh*Wp + 1 + 2w + dw] = 1 for tap k = dh*2 + dw   (shape (4, W, 2*Wp))
    pmask marks the real (non-pad) columns of one output-row pair (1, 2*Wp).
    """
    Wo = Wp - 2
    S = np.zeros((4, W, 2 * Wp), np.float32)
    for dh in range(2):
        for dw in range(2):
            k = dh * 2 + dw
            for w in range(W):
                S[k, w, dh * Wp + 1 + 2 * w + dw] = 1.0
    pmask = np.zeros((1, 2 * Wp), np.float32)
    for j in range(2 * Wp):
        if 1 <= (j % Wp) <= Wo:
            pmask[0, j] = 1.0
    return S, pmask


def _column_mask(Ho, Wo, Wp):
    """1.0 on real-pixel columns of the (Ho*Wp)-wide conv-output window."""
    L = Ho * Wp
    cmask = np.zeros((1, L), np.float32)
    for l in range(L):
        if (l % Wp) < Wo:
            cmask[0, l] = 1.0
    return cmask


# ----------------------------------------------------------------------------
# Fused DecBlock kernel (one grid step == one image).
#
# Slab geometry (flattened padded image, channels on sublanes, flat spatial on
# lanes): absolute slab index a of real pixel (y, x) is (y+1)*Wp + (x+1);
# a 3x3 'same' conv tap (ky, kx) for output column l is slab index
# l + ky*Wp + kx, and output column l corresponds to center pixel
# (l // Wp, l % Wp) for l % Wp < Wo.
# ----------------------------------------------------------------------------
def _dec_block_kernel(x_ref, skip_ref, wup_ref, bup_ref, s_ref, pmask_ref,
                      cmask_ref, w1_ref, b1_ref, w2_ref, b2_ref,
                      out_ref, up_sl, sk_sl, h_sl, *, H, W, Wp):
    f32 = jnp.float32
    Ho = 2 * H
    L = Ho * Wp
    base = Wp + 1                      # slab index of real pixel (0, 0)
    Cout = out_ref.shape[0]
    SL = up_sl.shape[1]

    # ---- zero only the never-written pad margins (NOT the whole slabs) -------
    for ref, lo in ((up_sl, Wp), (sk_sl, Wp), (h_sl, base)):
        ref[:, :lo] = jnp.zeros((ref.shape[0], lo), f32)
        ref[:, lo + L:] = jnp.zeros((ref.shape[0], SL - lo - L), f32)

    # ---- skip half of the concat: ONE lane-dense store (pre-padded to Wp) ----
    sk_sl[:, Wp:Wp + L] = skip_ref[...]

    # ---- ConvTranspose2d(k=2, s=2) -------------------------------------------
    # One fat channel-mix matmul (M = 4*Cout), then one output row-pair per
    # source row via the tiny (W, 2*Wp) interleave constants (linear cost).
    z = jnp.dot(wup_ref[...], x_ref[...], preferred_element_type=f32)  # (4*Cout, H*W)
    bias_pair = bup_ref[...] * pmask_ref[...]                          # (Cout, 2*Wp)
    for h in range(H):
        zh = z[:, h * W:(h + 1) * W]                                   # (4*Cout, W)
        pair = bias_pair
        for k in range(4):                                             # k = dh*2+dw
            pair = pair + jnp.dot(zh[k * Cout:(k + 1) * Cout, :], s_ref[k],
                                  preferred_element_type=f32)
        up_sl[:, Wp + 2 * h * Wp:Wp + (2 * h + 2) * Wp] = pair

    # ---- 3x3 'same' conv + ReLU: im2col (9 taps on sublanes) -> ONE matmul ---
    def conv3x3_relu(src_refs, w_ref, b_ref):
        taps = []
        for k in range(9):                                             # k = ky*3+kx
            off = (k // 3) * Wp + (k % 3)
            for r in src_refs:
                taps.append(r[:, off:off + L])
        col = jnp.concatenate(taps, axis=0)                            # (9*Cin', L)
        acc = jnp.dot(w_ref[...], col, preferred_element_type=f32)
        return jnp.maximum(acc + b_ref[...], 0.0)

    h_sl[:, base:base + L] = (conv3x3_relu((up_sl, sk_sl), w1_ref, b1_ref)
                              * cmask_ref[...])
    # Conv2 output stays in the padded-row layout (lane-dense store); the
    # wrapper trims the two pad columns per row with a cheap slice.
    out_ref[...] = conv3x3_relu((h_sl,), w2_ref, b2_ref).astype(out_ref.dtype)


# ----------------------------------------------------------------------------
# Wrapper
# ----------------------------------------------------------------------------
def dec_block(x, skip, params):
    """DecBlock.forward(inputs, skip) in NCHW, as one fused Pallas TPU kernel."""
    N, Cin, H, W = x.shape
    Cout = params["up_b"].shape[0]
    Ho, Wo = 2 * H, 2 * W
    Wp = Wo + 2                        # one zero-pad column on each side
    L = Ho * Wp                        # flattened padded-row spatial length
    SL = ((L + 2 * Wp + 2 + 127) // 128) * 128   # slab lanes (pad rows + guard)

    S, pmask = _row_scatter_constants(W, Wp)
    cmask = _column_mask(Ho, Wo, Wp)

    # One-time host-side repack of the (tiny) weights from PyTorch layouts:
    #   wup[(dh*2+dw)*Cout + co, ci]       = up_w[ci, co, dh, dw]
    #   w1[co, (ky*3+kx)*2*Cout + ci]      = c1_w[co, ci, ky, kx]
    #   w2[co, (ky*3+kx)*Cout + ci]        = c2_w[co, ci, ky, kx]
    wup = jnp.transpose(params["up_w"], (2, 3, 1, 0)).reshape(4 * Cout, Cin)
    w1 = jnp.transpose(params["c1_w"], (0, 2, 3, 1)).reshape(Cout, 9 * 2 * Cout)
    w2 = jnp.transpose(params["c2_w"], (0, 2, 3, 1)).reshape(Cout, 9 * Cout)
    bup = params["up_b"].reshape(Cout, 1)
    b1 = params["c1_b"].reshape(Cout, 1)
    b2 = params["c2_b"].reshape(Cout, 1)

    # Pre-pad skip to width Wp so the kernel does ONE lane-dense slab store.
    skip_p = jnp.pad(skip, ((0, 0), (0, 0), (0, 0), (1, 1))).reshape(N, Cout, L)

    kernel = functools.partial(_dec_block_kernel, H=H, W=W, Wp=Wp)
    const_spec = lambda shape: pl.BlockSpec(shape, lambda n: (0,) * len(shape))

    flops = N * (2 * (4 * Cout) * Cin * (H * W)          # up channel mix
                 + H * 4 * 2 * Cout * W * (2 * Wp)       # row interleave matmuls
                 + 2 * Cout * (18 * Cout) * L            # conv1
                 + 2 * Cout * (9 * Cout) * L)            # conv2
    bytes_accessed = 4 * (N * Cin * H * W + 2 * N * Cout * L
                          + wup.size + w1.size + w2.size
                          + S.size + pmask.size + cmask.size + 3 * Cout)
    cost = pl.CostEstimate(flops=int(flops), transcendentals=0,
                           bytes_accessed=int(bytes_accessed))

    slab_bytes = 3 * Cout * SL * 4
    io_bytes = 2 * 4 * (Cin * H * W + 2 * Cout * L)      # double-buffered blocks
    vmem_limit = int(min(64 << 20,
                         max(16 << 20, 2 * (slab_bytes + io_bytes)
                             + 2 * int(bytes_accessed))))

    out_p = pl.pallas_call(
        kernel,
        out_shape=jax.ShapeDtypeStruct((N, Cout, L), x.dtype),
        grid=(N,),
        in_specs=[
            pl.BlockSpec((None, Cin, H * W), lambda n: (n, 0, 0)),   # x
            pl.BlockSpec((None, Cout, L), lambda n: (n, 0, 0)),      # padded skip
            const_spec((4 * Cout, Cin)),                             # up weight
            const_spec((Cout, 1)),                                   # up bias
            const_spec((4, W, 2 * Wp)),                              # row interleave
            const_spec((1, 2 * Wp)),                                 # row-pair mask
            const_spec((1, L)),                                      # column mask
            const_spec((Cout, 9 * 2 * Cout)),                        # conv1 weight
            const_spec((Cout, 1)),                                   # conv1 bias
            const_spec((Cout, 9 * Cout)),                            # conv2 weight
            const_spec((Cout, 1)),                                   # conv2 bias
        ],
        out_specs=pl.BlockSpec((None, Cout, L), lambda n: (n, 0, 0)),
        scratch_shapes=[
            pltpu.VMEM((Cout, SL), jnp.float32),   # padded 'up' slab
            pltpu.VMEM((Cout, SL), jnp.float32),   # padded 'skip' slab
            pltpu.VMEM((Cout, SL), jnp.float32),   # padded conv1-output slab
        ],
        compiler_params=pltpu.CompilerParams(
            dimension_semantics=("parallel",),
            vmem_limit_bytes=vmem_limit),
        cost_estimate=cost,
    )(x.reshape(N, Cin, H * W), skip_p, wup, bup, jnp.asarray(S),
      jnp.asarray(pmask), jnp.asarray(cmask), w1, b1, w2, b2)

    # Trim the per-row pad columns outside the kernel (cheap strided slice).
    return out_p.reshape(N, Cout, Ho, Wp)[:, :, :, :Wo]


# ----------------------------------------------------------------------------
# Pure-JAX reference (independent of the Pallas path) for verification
# ----------------------------------------------------------------------------
def dec_block_ref(x, skip, params):
    N, Cin, H, W = x.shape
    Cout = params["up_b"].shape[0]
    up = jnp.einsum("nchw,codu->nohdwu", x, params["up_w"]).reshape(
        N, Cout, 2 * H, 2 * W)
    up = up + params["up_b"][None, :, None, None]
    cat = jnp.concatenate([up, skip], axis=1)

    def conv(xx, w, b):
        y = lax.conv_general_dilated(
            xx, w, window_strides=(1, 1), padding="SAME",
            dimension_numbers=("NCHW", "OIHW", "NCHW"))
        return jnp.maximum(y + b[None, :, None, None], 0.0)

    h = conv(cat, params["c1_w"], params["c1_b"])
    return conv(h, params["c2_w"], params["c2_b"])


# ----------------------------------------------------------------------------
# Main
# ----------------------------------------------------------------------------
if __name__ == "__main__":
    key = jax.random.PRNGKey(0)
    in_c, out_c = 8, 4
    N, H, W = 2, 8, 8                      # skip / output spatial is 16 x 16

    k = jax.random.split(key, 8)
    params = {
        # PyTorch-native parameter layouts:
        "up_w": 0.1 * jax.random.normal(k[0], (in_c, out_c, 2, 2), jnp.float32),
        "up_b": 0.05 * jax.random.normal(k[1], (out_c,), jnp.float32),
        "c1_w": 0.1 * jax.random.normal(k[2], (out_c, 2 * out_c, 3, 3), jnp.float32),
        "c1_b": 0.05 * jax.random.normal(k[3], (out_c,), jnp.float32),
        "c2_w": 0.1 * jax.random.normal(k[4], (out_c, out_c, 3, 3), jnp.float32),
        "c2_b": 0.05 * jax.random.normal(k[5], (out_c,), jnp.float32),
    }

    x = jax.random.normal(k[6], (N, in_c, H, W), jnp.float32)
    skip = jax.random.normal(k[7], (N, out_c, 2 * H, 2 * W), jnp.float32)

    out = jax.block_until_ready(jax.jit(dec_block)(x, skip, params))
    ref = jax.block_until_ready(dec_block_ref(x, skip, params))

    assert out.shape == (N, out_c, 2 * H, 2 * W), out.shape
    err = float(jnp.max(jnp.abs(out - ref)))
    assert jnp.allclose(out, ref, atol=1e-4, rtol=1e-4), err
    print("KERNEL_OK")
</pallas_src>

<mosaic_0001>
module attributes {stable_mosaic.version = 11 : i64} {
  func.func @_dec_block_kernel(%arg0: i32, %arg1: memref<1x8x64xf32, #tpu.memory_space<vmem>>, %arg2: memref<1x4x288xf32, #tpu.memory_space<vmem>>, %arg3: memref<16x8xf32, #tpu.memory_space<vmem>>, %arg4: memref<4x1xf32, #tpu.memory_space<vmem>>, %arg5: memref<4x8x36xf32, #tpu.memory_space<vmem>>, %arg6: memref<1x36xf32, #tpu.memory_space<vmem>>, %arg7: memref<1x288xf32, #tpu.memory_space<vmem>>, %arg8: memref<4x72xf32, #tpu.memory_space<vmem>>, %arg9: memref<4x1xf32, #tpu.memory_space<vmem>>, %arg10: memref<4x36xf32, #tpu.memory_space<vmem>>, %arg11: memref<4x1xf32, #tpu.memory_space<vmem>>, %arg12: memref<1x4x288xf32, #tpu.memory_space<vmem>>, %arg13: memref<4x384xf32, #tpu.memory_space<vmem>>, %arg14: memref<4x384xf32, #tpu.memory_space<vmem>>, %arg15: memref<4x384xf32, #tpu.memory_space<vmem>>) attributes {dimension_semantics = [#tpu.dimension_semantics<parallel>], iteration_bounds = array<i64: 2>, scalar_prefetch = 0 : i64, scratch_operands = 3 : i64, tpu.core_type = #tpu.core_type<tc>, window_params = [{transform_indices = @transform_0, window_bounds = array<i64: 1, 8, 64>}, {transform_indices = @transform_1, window_bounds = array<i64: 1, 4, 288>}, {pipeline_mode = #tpu.pipeline_mode<synchronous>, transform_indices = @transform_2, window_bounds = array<i64: 16, 8>}, {pipeline_mode = #tpu.pipeline_mode<synchronous>, transform_indices = @transform_3, window_bounds = array<i64: 4, 1>}, {pipeline_mode = #tpu.pipeline_mode<synchronous>, transform_indices = @transform_4, window_bounds = array<i64: 4, 8, 36>}, {pipeline_mode = #tpu.pipeline_mode<synchronous>, transform_indices = @transform_5, window_bounds = array<i64: 1, 36>}, {pipeline_mode = #tpu.pipeline_mode<synchronous>, transform_indices = @transform_6, window_bounds = array<i64: 1, 288>}, {pipeline_mode = #tpu.pipeline_mode<synchronous>, transform_indices = @transform_7, window_bounds = array<i64: 4, 72>}, {pipeline_mode = #tpu.pipeline_mode<synchronous>, transform_indices = @transform_8, window_bounds = array<i64: 4, 1>}, {pipeline_mode = #tpu.pipeline_mode<synchronous>, transform_indices = @transform_9, window_bounds = array<i64: 4, 36>}, {pipeline_mode = #tpu.pipeline_mode<synchronous>, transform_indices = @transform_10, window_bounds = array<i64: 4, 1>}, {transform_indices = @transform_11, window_bounds = array<i64: 1, 4, 288>}]} {
    %cst = arith.constant 0.000000e+00 : f32
    %0 = vector.broadcast %cst : f32 to vector<4x18xf32>
    %c0 = arith.constant 0 : index
    %c0_0 = arith.constant 0 : index
    %1 = vector.load %arg13[%c0, %c0_0] : memref<4x384xf32, #tpu.memory_space<vmem>>, vector<4x18xf32>
    tpu.vector_store %arg13[%c0, %c0_0], %0 {strides = array<i32>} : memref<4x384xf32, #tpu.memory_space<vmem>>, vector<4x18xf32>,
    %cst_1 = arith.constant 0.000000e+00 : f32
    %2 = vector.broadcast %cst_1 : f32 to vector<4x78xf32>
    %c0_2 = arith.constant 0 : index
    %c306 = arith.constant 306 : index
    %3 = vector.load %arg13[%c0_2, %c306] : memref<4x384xf32, #tpu.memory_space<vmem>>, vector<4x78xf32>
    tpu.vector_store %arg13[%c0_2, %c306], %2 {strides = array<i32>} : memref<4x384xf32, #tpu.memory_space<vmem>>, vector<4x78xf32>,
    %cst_3 = arith.constant 0.000000e+00 : f32
    %4 = vector.broadcast %cst_3 : f32 to vector<4x18xf32>
    %c0_4 = arith.constant 0 : index
    %c0_5 = arith.constant 0 : index
    %5 = vector.load %arg14[%c0_4, %c0_5] : memref<4x384xf32, #tpu.memory_space<vmem>>, vector<4x18xf32>
    tpu.vector_store %arg14[%c0_4, %c0_5], %4 {strides = array<i32>} : memref<4x384xf32, #tpu.memory_space<vmem>>, vector<4x18xf32>,
    %cst_6 = arith.constant 0.000000e+00 : f32
    %6 = vector.broadcast %cst_6 : f32 to vector<4x78xf32>
    %c0_7 = arith.constant 0 : index
    %c306_8 = arith.constant 306 : index
    %7 = vector.load %arg14[%c0_7, %c306_8] : memref<4x384xf32, #tpu.memory_space<vmem>>, vector<4x78xf32>
    tpu.vector_store %arg14[%c0_7, %c306_8], %6 {strides = array<i32>} : memref<4x384xf32, #tpu.memory_space<vmem>>, vector<4x78xf32>,
    %cst_9 = arith.constant 0.000000e+00 : f32
    %8 = vector.broadcast %cst_9 : f32 to vector<4x19xf32>
    %c0_10 = arith.constant 0 : index
    %c0_11 = arith.constant 0 : index
    %9 = vector.load %arg15[%c0_10, %c0_11] : memref<4x384xf32, #tpu.memory_space<vmem>>, vector<4x19xf32>
    tpu.vector_store %arg15[%c0_10, %c0_11], %8 {strides = array<i32>} : memref<4x384xf32, #tpu.memory_space<vmem>>, vector<4x19xf32>,
    %cst_12 = arith.constant 0.000000e+00 : f32
    %10 = vector.broadcast %cst_12 : f32 to vector<4x77xf32>
    %c0_13 = arith.constant 0 : index
    %c307 = arith.constant 307 : index
    %11 = vector.load %arg15[%c0_13, %c307] : memref<4x384xf32, #tpu.memory_space<vmem>>, vector<4x77xf32>
    tpu.vector_store %arg15[%c0_13, %c307], %10 {strides = array<i32>} : memref<4x384xf32, #tpu.memory_space<vmem>>, vector<4x77xf32>,
    %c0_14 = arith.constant 0 : index
    %c0_15 = arith.constant 0 : index
    %c0_16 = arith.constant 0 : index
    %12 = vector.load %arg2[%c0_14, %c0_15, %c0_16] : memref<1x4x288xf32, #tpu.memory_space<vmem>>, vector<1x4x288xf32>
    %13 = vector.shape_cast %12 : vector<1x4x288xf32> to vector<4x288xf32>
    %c0_17 = arith.constant 0 : index
    %c18 = arith.constant 18 : index
    %14 = vector.load %arg14[%c0_17, %c18] : memref<4x384xf32, #tpu.memory_space<vmem>>, vector<4x288xf32>
    tpu.vector_store %arg14[%c0_17, %c18], %13 {strides = array<i32>} : memref<4x384xf32, #tpu.memory_space<vmem>>, vector<4x288xf32>,
    %c0_18 = arith.constant 0 : index
    %c0_19 = arith.constant 0 : index
    %15 = vector.load %arg3[%c0_18, %c0_19] : memref<16x8xf32, #tpu.memory_space<vmem>>, vector<16x8xf32>
    %c0_20 = arith.constant 0 : index
    %c0_21 = arith.constant 0 : index
    %c0_22 = arith.constant 0 : index
    %16 = vector.load %arg1[%c0_20, %c0_21, %c0_22] : memref<1x8x64xf32, #tpu.memory_space<vmem>>, vector<1x8x64xf32>
    %17 = vector.shape_cast %16 : vector<1x8x64xf32> to vector<8x64xf32>
    %cst_23 = arith.constant dense<0.000000e+00> : vector<16x64xf32>
    %18 = tpu.matmul %15, %17, %cst_23 {dimension_numbers = #tpu.dot_dimension_numbers<[1], [0], [0], [1], [0, 0, 1, 1], [], []>} : vector<16x8xf32>, vector<8x64xf32>, vector<16x64xf32> -> vector<16x64xf32>
    %c0_24 = arith.constant 0 : index
    %c0_25 = arith.constant 0 : index
    %19 = vector.load %arg4[%c0_24, %c0_25] : memref<4x1xf32, #tpu.memory_space<vmem>>, vector<4x1xf32>
    %c0_26 = arith.constant 0 : index
    %c0_27 = arith.constant 0 : index
    %20 = vector.load %arg6[%c0_26, %c0_27] : memref<1x36xf32, #tpu.memory_space<vmem>>, vector<1x36xf32>
    %21 = vector.broadcast %19 : vector<4x1xf32> to vector<4x36xf32>
    %22 = vector.broadcast %20 : vector<1x36xf32> to vector<4x36xf32>
    %23 = arith.mulf %21, %22 : vector<4x36xf32>
    %24 = vector.extract_strided_slice %18 {offsets = [0, 0], sizes = [16, 8], strides = [1, 1]} : vector<16x64xf32> to vector<16x8xf32>
    %25 = vector.extract_strided_slice %24 {offsets = [0, 0], sizes = [4, 8], strides = [1, 1]} : vector<16x8xf32> to vector<4x8xf32>
    %c0_28 = arith.constant 0 : index
    %c0_29 = arith.constant 0 : index
    %c0_30 = arith.constant 0 : index
    %26 = vector.load %arg5[%c0_28, %c0_29, %c0_30] : memref<4x8x36xf32, #tpu.memory_space<vmem>>, vector<1x8x36xf32>
    %27 = vector.shape_cast %26 : vector<1x8x36xf32> to vector<8x36xf32>
    %cst_31 = arith.constant dense<0.000000e+00> : vector<4x36xf32>
    %28 = tpu.matmul %25, %27, %cst_31 {dimension_numbers = #tpu.dot_dimension_numbers<[1], [0], [0], [1], [0, 0, 1, 1], [], []>} : vector<4x8xf32>, vector<8x36xf32>, vector<4x36xf32> -> vector<4x36xf32>
    %29 = arith.addf %23, %28 : vector<4x36xf32>
    %30 = vector.extract_strided_slice %24 {offsets = [4, 0], sizes = [4, 8], strides = [1, 1]} : vector<16x8xf32> to vector<4x8xf32>
    %c1 = arith.constant 1 : index
    %c0_32 = arith.constant 0 : index
    %c0_33 = arith.constant 0 : index
    %31 = vector.load %arg5[%c1, %c0_32, %c0_33] : memref<4x8x36xf32, #tpu.memory_space<vmem>>, vector<1x8x36xf32>
    %32 = vector.shape_cast %31 : vector<1x8x36xf32> to vector<8x36xf32>
    %cst_34 = arith.constant dense<0.000000e+00> : vector<4x36xf32>
    %33 = tpu.matmul %30, %32, %cst_34 {dimension_numbers = #tpu.dot_dimension_numbers<[1], [0], [0], [1], [0, 0, 1, 1], [], []>} : vector<4x8xf32>, vector<8x36xf32>, vector<4x36xf32> -> vector<4x36xf32>
    %34 = arith.addf %29, %33 : vector<4x36xf32>
    %35 = vector.extract_strided_slice %24 {offsets = [8, 0], sizes = [4, 8], strides = [1, 1]} : vector<16x8xf32> to vector<4x8xf32>
    %c2 = arith.constant 2 : index
    %c0_35 = arith.constant 0 : index
    %c0_36 = arith.constant 0 : index
    %36 = vector.load %arg5[%c2, %c0_35, %c0_36] : memref<4x8x36xf32, #tpu.memory_space<vmem>>, vector<1x8x36xf32>
    %37 = vector.shape_cast %36 : vector<1x8x36xf32> to vector<8x36xf32>
    %cst_37 = arith.constant dense<0.000000e+00> : vector<4x36xf32>
    %38 = tpu.matmul %35, %37, %cst_37 {dimension_numbers = #tpu.dot_dimension_numbers<[1], [0], [0], [1], [0, 0, 1, 1], [], []>} : vector<4x8xf32>, vector<8x36xf32>, vector<4x36xf32> -> vector<4x36xf32>
    %39 = arith.addf %34, %38 : vector<4x36xf32>
    %40 = vector.extract_strided_slice %24 {offsets = [12, 0], sizes = [4, 8], strides = [1, 1]} : vector<16x8xf32> to vector<4x8xf32>
    %c3 = arith.constant 3 : index
    %c0_38 = arith.constant 0 : index
    %c0_39 = arith.constant 0 : index
    %41 = vector.load %arg5[%c3, %c0_38, %c0_39] : memref<4x8x36xf32, #tpu.memory_space<vmem>>, vector<1x8x36xf32>
    %42 = vector.shape_cast %41 : vector<1x8x36xf32> to vector<8x36xf32>
    %cst_40 = arith.constant dense<0.000000e+00> : vector<4x36xf32>
    %43 = tpu.matmul %40, %42, %cst_40 {dimension_numbers = #tpu.dot_dimension_numbers<[1], [0], [0], [1], [0, 0, 1, 1], [], []>} : vector<4x8xf32>, vector<8x36xf32>, vector<4x36xf32> -> vector<4x36xf32>
    %44 = arith.addf %39, %43 : vector<4x36xf32>
    %c0_41 = arith.constant 0 : index
    %c18_42 = arith.constant 18 : index
    %45 = vector.load %arg13[%c0_41, %c18_42] : memref<4x384xf32, #tpu.memory_space<vmem>>, vector<4x36xf32>
    tpu.vector_store %arg13[%c0_41, %c18_42], %44 {strides = array<i32>} : memref<4x384xf32, #tpu.memory_space<vmem>>, vector<4x36xf32>,
    %46 = vector.extract_strided_slice %18 {offsets = [0, 8], sizes = [16, 8], strides = [1, 1]} : vector<16x64xf32> to vector<16x8xf32>
    %47 = vector.extract_strided_slice %46 {offsets = [0, 0], sizes = [4, 8], strides = [1, 1]} : vector<16x8xf32> to vector<4x8xf32>
    %c0_43 = arith.constant 0 : index
    %c0_44 = arith.constant 0 : index
    %c0_45 = arith.constant 0 : index
    %48 = vector.load %arg5[%c0_43, %c0_44, %c0_45] : memref<4x8x36xf32, #tpu.memory_space<vmem>>, vector<1x8x36xf32>
    %49 = vector.shape_cast %48 : vector<1x8x36xf32> to vector<8x36xf32>
    %cst_46 = arith.constant dense<0.000000e+00> : vector<4x36xf32>
    %50 = tpu.matmul %47, %49, %cst_46 {dimension_numbers = #tpu.dot_dimension_numbers<[1], [0], [0], [1], [0, 0, 1, 1], [], []>} : vector<4x8xf32>, vector<8x36xf32>, vector<4x36xf32> -> vector<4x36xf32>
    %51 = arith.addf %23, %50 : vector<4x36xf32>
    %52 = vector.extract_strided_slice %46 {offsets = [4, 0], sizes = [4, 8], strides = [1, 1]} : vector<16x8xf32> to vector<4x8xf32>
    %c1_47 = arith.constant 1 : index
    %c0_48 = arith.constant 0 : index
    %c0_49 = arith.constant 0 : index
    %53 = vector.load %arg5[%c1_47, %c0_48, %c0_49] : memref<4x8x36xf32, #tpu.memory_space<vmem>>, vector<1x8x36xf32>
    %54 = vector.shape_cast %53 : vector<1x8x36xf32> to vector<8x36xf32>
    %cst_50 = arith.constant dense<0.000000e+00> : vector<4x36xf32>
    %55 = tpu.matmul %52, %54, %cst_50 {dimension_numbers = #tpu.dot_dimension_numbers<[1], [0], [0], [1], [0, 0, 1, 1], [], []>} : vector<4x8xf32>, vector<8x36xf32>, vector<4x36xf32> -> vector<4x36xf32>
    %56 = arith.addf %51, %55 : vector<4x36xf32>
    %57 = vector.extract_strided_slice %46 {offsets = [8, 0], sizes = [4, 8], strides = [1, 1]} : vector<16x8xf32> to vector<4x8xf32>
    %c2_51 = arith.constant 2 : index
    %c0_52 = arith.constant 0 : index
    %c0_53 = arith.constant 0 : index
    %58 = vector.load %arg5[%c2_51, %c0_52, %c0_53] : memref<4x8x36xf32, #tpu.memory_space<vmem>>, vector<1x8x36xf32>
    %59 = vector.shape_cast %58 : vector<1x8x36xf32> to vector<8x36xf32>
    %cst_54 = arith.constant dense<0.000000e+00> : vector<4x36xf32>
    %60 = tpu.matmul %57, %59, %cst_54 {dimension_numbers = #tpu.dot_dimension_numbers<[1], [0], [0], [1], [0, 0, 1, 1], [], []>} : vector<4x8xf32>, vector<8x36xf32>, vector<4x36xf32> -> vector<4x36xf32>
    %61 = arith.addf %56, %60 : vector<4x36xf32>
    %62 = vector.extract_strided_slice %46 {offsets = [12, 0], sizes = [4, 8], strides = [1, 1]} : vector<16x8xf32> to vector<4x8xf32>
    %c3_55 = arith.constant 3 : index
    %c0_56 = arith.constant 0 : index
    %c0_57 = arith.constant 0 : index
    %63 = vector.load %arg5[%c3_55, %c0_56, %c0_57] : memref<4x8x36xf32, #tpu.memory_space<vmem>>, vector<1x8x36xf32>
    %64 = vector.shape_cast %63 : vector<1x8x36xf32> to vector<8x36xf32>
    %cst_58 = arith.constant dense<0.000000e+00> : vector<4x36xf32>
    %65 = tpu.matmul %62, %64, %cst_58 {dimension_numbers = #tpu.dot_dimension_numbers<[1], [0], [0], [1], [0, 0, 1, 1], [], []>} : vector<4x8xf32>, vector<8x36xf32>, vector<4x36xf32> -> vector<4x36xf32>
    %66 = arith.addf %61, %65 : vector<4x36xf32>
    %c0_59 = arith.constant 0 : index
    %c54 = arith.constant 54 : index
    %67 = vector.load %arg13[%c0_59, %c54] : memref<4x384xf32, #tpu.memory_space<vmem>>, vector<4x36xf32>
    tpu.vector_store %arg13[%c0_59, %c54], %66 {strides = array<i32>} : memref<4x384xf32, #tpu.memory_space<vmem>>, vector<4x36xf32>,
    %68 = vector.extract_strided_slice %18 {offsets = [0, 16], sizes = [16, 8], strides = [1, 1]} : vector<16x64xf32> to vector<16x8xf32>
    %69 = vector.extract_strided_slice %68 {offsets = [0, 0], sizes = [4, 8], strides = [1, 1]} : vector<16x8xf32> to vector<4x8xf32>
    %c0_60 = arith.constant 0 : index
    %c0_61 = arith.constant 0 : index
    %c0_62 = arith.constant 0 : index
    %70 = vector.load %arg5[%c0_60, %c0_61, %c0_62] : memref<4x8x36xf32, #tpu.memory_space<vmem>>, vector<1x8x36xf32>
    %71 = vector.shape_cast %70 : vector<1x8x36xf32> to vector<8x36xf32>
    %cst_63 = arith.constant dense<0.000000e+00> : vector<4x36xf32>
    %72 = tpu.matmul %69, %71, %cst_63 {dimension_numbers = #tpu.dot_dimension_numbers<[1], [0], [0], [1], [0, 0, 1, 1], [], []>} : vector<4x8xf32>, vector<8x36xf32>, vector<4x36xf32> -> vector<4x36xf32>
    %73 = arith.addf %23, %72 : vector<4x36xf32>
    %74 = vector.extract_strided_slice %68 {offsets = [4, 0], sizes = [4, 8], strides = [1, 1]} : vector<16x8xf32> to vector<4x8xf32>
    %c1_64 = arith.constant 1 : index
    %c0_65 = arith.constant 0 : index
    %c0_66 = arith.constant 0 : index
    %75 = vector.load %arg5[%c1_64, %c0_65, %c0_66] : memref<4x8x36xf32, #tpu.memory_space<vmem>>, vector<1x8x36xf32>
    %76 = vector.shape_cast %75 : vector<1x8x36xf32> to vector<8x36xf32>
    %cst_67 = arith.constant dense<0.000000e+00> : vector<4x36xf32>
    %77 = tpu.matmul %74, %76, %cst_67 {dimension_numbers = #tpu.dot_dimension_numbers<[1], [0], [0], [1], [0, 0, 1, 1], [], []>} : vector<4x8xf32>, vector<8x36xf32>, vector<4x36xf32> -> vector<4x36xf32>
    %78 = arith.addf %73, %77 : vector<4x36xf32>
    %79 = vector.extract_strided_slice %68 {offsets = [8, 0], sizes = [4, 8], strides = [1, 1]} : vector<16x8xf32> to vector<4x8xf32>
    %c2_68 = arith.constant 2 : index
    %c0_69 = arith.constant 0 : index
    %c0_70 = arith.constant 0 : index
    %80 = vector.load %arg5[%c2_68, %c0_69, %c0_70] : memref<4x8x36xf32, #tpu.memory_space<vmem>>, vector<1x8x36xf32>
    %81 = vector.shape_cast %80 : vector<1x8x36xf32> to vector<8x36xf32>
    %cst_71 = arith.constant dense<0.000000e+00> : vector<4x36xf32>
    %82 = tpu.matmul %79, %81, %cst_71 {dimension_numbers = #tpu.dot_dimension_numbers<[1], [0], [0], [1], [0, 0, 1, 1], [], []>} : vector<4x8xf32>, vector<8x36xf32>, vector<4x36xf32> -> vector<4x36xf32>
    %83 = arith.addf %78, %82 : vector<4x36xf32>
    %84 = vector.extract_strided_slice %68 {offsets = [12, 0], sizes = [4, 8], strides = [1, 1]} : vector<16x8xf32> to vector<4x8xf32>
    %c3_72 = arith.constant 3 : index
    %c0_73 = arith.constant 0 : index
    %c0_74 = arith.constant 0 : index
    %85 = vector.load %arg5[%c3_72, %c0_73, %c0_74] : memref<4x8x36xf32, #tpu.memory_space<vmem>>, vector<1x8x36xf32>
    %86 = vector.shape_cast %85 : vector<1x8x36xf32> to vector<8x36xf32>
    %cst_75 = arith.constant dense<0.000000e+00> : vector<4x36xf32>
    %87 = tpu.matmul %84, %86, %cst_75 {dimension_numbers = #tpu.dot_dimension_numbers<[1], [0], [0], [1], [0, 0, 1, 1], [], []>} : vector<4x8xf32>, vector<8x36xf32>, vector<4x36xf32> -> vector<4x36xf32>
    %88 = arith.addf %83, %87 : vector<4x36xf32>
    %c0_76 = arith.constant 0 : index
    %c90 = arith.constant 90 : index
    %89 = vector.load %arg13[%c0_76, %c90] : memref<4x384xf32, #tpu.memory_space<vmem>>, vector<4x36xf32>
    tpu.vector_store %arg13[%c0_76, %c90], %88 {strides = array<i32>} : memref<4x384xf32, #tpu.memory_space<vmem>>, vector<4x36xf32>,
    %90 = vector.extract_strided_slice %18 {offsets = [0, 24], sizes = [16, 8], strides = [1, 1]} : vector<16x64xf32> to vector<16x8xf32>
    %91 = vector.extract_strided_slice %90 {offsets = [0, 0], sizes = [4, 8], strides = [1, 1]} : vector<16x8xf32> to vector<4x8xf32>
    %c0_77 = arith.constant 0 : index
    %c0_78 = arith.constant 0 : index
    %c0_79 = arith.constant 0 : index
    %92 = vector.load %arg5[%c0_77, %c0_78, %c0_79] : memref<4x8x36xf32, #tpu.memory_space<vmem>>, vector<1x8x36xf32>
    %93 = vector.shape_cast %92 : vector<1x8x36xf32> to vector<8x36xf32>
    %cst_80 = arith.constant dense<0.000000e+00> : vector<4x36xf32>
    %94 = tpu.matmul %91, %93, %cst_80 {dimension_numbers = #tpu.dot_dimension_numbers<[1], [0], [0], [1], [0, 0, 1, 1], [], []>} : vector<4x8xf32>, vector<8x36xf32>, vector<4x36xf32> -> vector<4x36xf32>
    %95 = arith.addf %23, %94 : vector<4x36xf32>
    %96 = vector.extract_strided_slice %90 {offsets = [4, 0], sizes = [4, 8], strides = [1, 1]} : vector<16x8xf32> to vector<4x8xf32>
    %c1_81 = arith.constant 1 : index
    %c0_82 = arith.constant 0 : index
    %c0_83 = arith.constant 0 : index
    %97 = vector.load %arg5[%c1_81, %c0_82, %c0_83] : memref<4x8x36xf32, #tpu.memory_space<vmem>>, vector<1x8x36xf32>
    %98 = vector.shape_cast %97 : vector<1x8x36xf32> to vector<8x36xf32>
    %cst_84 = arith.constant dense<0.000000e+00> : vector<4x36xf32>
    %99 = tpu.matmul %96, %98, %cst_84 {dimension_numbers = #tpu.dot_dimension_numbers<[1], [0], [0], [1], [0, 0, 1, 1], [], []>} : vector<4x8xf32>, vector<8x36xf32>, vector<4x36xf32> -> vector<4x36xf32>
    %100 = arith.addf %95, %99 : vector<4x36xf32>
    %101 = vector.extract_strided_slice %90 {offsets = [8, 0], sizes = [4, 8], strides = [1, 1]} : vector<16x8xf32> to vector<4x8xf32>
    %c2_85 = arith.constant 2 : index
    %c0_86 = arith.constant 0 : index
    %c0_87 = arith.constant 0 : index
    %102 = vector.load %arg5[%c2_85, %c0_86, %c0_87] : memref<4x8x36xf32, #tpu.memory_space<vmem>>, vector<1x8x36xf32>
    %103 = vector.shape_cast %102 : vector<1x8x36xf32> to vector<8x36xf32>
    %cst_88 = arith.constant dense<0.000000e+00> : vector<4x36xf32>
    %104 = tpu.matmul %101, %103, %cst_88 {dimension_numbers = #tpu.dot_dimension_numbers<[1], [0], [0], [1], [0, 0, 1, 1], [], []>} : vector<4x8xf32>, vector<8x36xf32>, vector<4x36xf32> -> vector<4x36xf32>
    %105 = arith.addf %100, %104 : vector<4x36xf32>
    %106 = vector.extract_strided_slice %90 {offsets = [12, 0], sizes = [4, 8], strides = [1, 1]} : vector<16x8xf32> to vector<4x8xf32>
    %c3_89 = arith.constant 3 : index
    %c0_90 = arith.constant 0 : index
    %c0_91 = arith.constant 0 : index
    %107 = vector.load %arg5[%c3_89, %c0_90, %c0_91] : memref<4x8x36xf32, #tpu.memory_space<vmem>>, vector<1x8x36xf32>
    %108 = vector.shape_cast %107 : vector<1x8x36xf32> to vector<8x36xf32>
    %cst_92 = arith.constant dense<0.000000e+00> : vector<4x36xf32>
    %109 = tpu.matmul %106, %108, %cst_92 {dimension_numbers = #tpu.dot_dimension_numbers<[1], [0], [0], [1], [0, 0, 1, 1], [], []>} : vector<4x8xf32>, vector<8x36xf32>, vector<4x36xf32> -> vector<4x36xf32>
    %110 = arith.addf %105, %109 : vector<4x36xf32>
    %c0_93 = arith.constant 0 : index
    %c126 = arith.constant 126 : index
    %111 = vector.load %arg13[%c0_93, %c126] : memref<4x384xf32, #tpu.memory_space<vmem>>, vector<4x36xf32>
    tpu.vector_store %arg13[%c0_93, %c126], %110 {strides = array<i32>} : memref<4x384xf32, #tpu.memory_space<vmem>>, vector<4x36xf32>,
    %112 = vector.extract_strided_slice %18 {offsets = [0, 32], sizes = [16, 8], strides = [1, 1]} : vector<16x64xf32> to vector<16x8xf32>
    %113 = vector.extract_strided_slice %112 {offsets = [0, 0], sizes = [4, 8], strides = [1, 1]} : vector<16x8xf32> to vector<4x8xf32>
    %c0_94 = arith.constant 0 : index
    %c0_95 = arith.constant 0 : index
    %c0_96 = arith.constant 0 : index
    %114 = vector.load %arg5[%c0_94, %c0_95, %c0_96] : memref<4x8x36xf32, #tpu.memory_space<vmem>>, vector<1x8x36xf32>
    %115 = vector.shape_cast %114 : vector<1x8x36xf32> to vector<8x36xf32>
    %cst_97 = arith.constant dense<0.000000e+00> : vector<4x36xf32>
    %116 = tpu.matmul %113, %115, %cst_97 {dimension_numbers = #tpu.dot_dimension_numbers<[1], [0], [0], [1], [0, 0, 1, 1], [], []>} : vector<4x8xf32>, vector<8x36xf32>, vector<4x36xf32> -> vector<4x36xf32>
    %117 = arith.addf %23, %116 : vector<4x36xf32>
    %118 = vector.extract_strided_slice %112 {offsets = [4, 0], sizes = [4, 8], strides = [1, 1]} : vector<16x8xf32> to vector<4x8xf32>
    %c1_98 = arith.constant 1 : index
    %c0_99 = arith.constant 0 : index
    %c0_100 = arith.constant 0 : index
    %119 = vector.load %arg5[%c1_98, %c0_99, %c0_100] : memref<4x8x36xf32, #tpu.memory_space<vmem>>, vector<1x8x36xf32>
    %120 = vector.shape_cast %119 : vector<1x8x36xf32> to vector<8x36xf32>
    %cst_101 = arith.constant dense<0.000000e+00> : vector<4x36xf32>
    %121 = tpu.matmul %118, %120, %cst_101 {dimension_numbers = #tpu.dot_dimension_numbers<[1], [0], [0], [1], [0, 0, 1, 1], [], []>} : vector<4x8xf32>, vector<8x36xf32>, vector<4x36xf32> -> vector<4x36xf32>
    %122 = arith.addf %117, %121 : vector<4x36xf32>
    %123 = vector.extract_strided_slice %112 {offsets = [8, 0], sizes = [4, 8], strides = [1, 1]} : vector<16x8xf32> to vector<4x8xf32>
    %c2_102 = arith.constant 2 : index
    %c0_103 = arith.constant 0 : index
    %c0_104 = arith.constant 0 : index
    %124 = vector.load %arg5[%c2_102, %c0_103, %c0_104] : memref<4x8x36xf32, #tpu.memory_space<vmem>>, vector<1x8x36xf32>
    %125 = vector.shape_cast %124 : vector<1x8x36xf32> to vector<8x36xf32>
    %cst_105 = arith.constant dense<0.000000e+00> : vector<4x36xf32>
    %126 = tpu.matmul %123, %125, %cst_105 {dimension_numbers = #tpu.dot_dimension_numbers<[1], [0], [0], [1], [0, 0, 1, 1], [], []>} : vector<4x8xf32>, vector<8x36xf32>, vector<4x36xf32> -> vector<4x36xf32>
    %127 = arith.addf %122, %126 : vector<4x36xf32>
    %128 = vector.extract_strided_slice %112 {offsets = [12, 0], sizes = [4, 8], strides = [1, 1]} : vector<16x8xf32> to vector<4x8xf32>
    %c3_106 = arith.constant 3 : index
    %c0_107 = arith.constant 0 : index
    %c0_108 = arith.constant 0 : index
    %129 = vector.load %arg5[%c3_106, %c0_107, %c0_108] : memref<4x8x36xf32, #tpu.memory_space<vmem>>, vector<1x8x36xf32>
    %130 = vector.shape_cast %129 : vector<1x8x36xf32> to vector<8x36xf32>
    %cst_109 = arith.constant dense<0.000000e+00> : vector<4x36xf32>
    %131 = tpu.matmul %128, %130, %cst_109 {dimension_numbers = #tpu.dot_dimension_numbers<[1], [0], [0], [1], [0, 0, 1, 1], [], []>} : vector<4x8xf32>, vector<8x36xf32>, vector<4x36xf32> -> vector<4x36xf32>
    %132 = arith.addf %127, %131 : vector<4x36xf32>
    %c0_110 = arith.constant 0 : index
    %c162 = arith.constant 162 : index
    %133 = vector.load %arg13[%c0_110, %c162] : memref<4x384xf32, #tpu.memory_space<vmem>>, vector<4x36xf32>
    tpu.vector_store %arg13[%c0_110, %c162], %132 {strides = array<i32>} : memref<4x384xf32, #tpu.memory_space<vmem>>, vector<4x36xf32>,
    %134 = vector.extract_strided_slice %18 {offsets = [0, 40], sizes = [16, 8], strides = [1, 1]} : vector<16x64xf32> to vector<16x8xf32>
    %135 = vector.extract_strided_slice %134 {offsets = [0, 0], sizes = [4, 8], strides = [1, 1]} : vector<16x8xf32> to vector<4x8xf32>
    %c0_111 = arith.constant 0 : index
    %c0_112 = arith.constant 0 : index
    %c0_113 = arith.constant 0 : index
    %136 = vector.load %arg5[%c0_111, %c0_112, %c0_113] : memref<4x8x36xf32, #tpu.memory_space<vmem>>, vector<1x8x36xf32>
    %137 = vector.shape_cast %136 : vector<1x8x36xf32> to vector<8x36xf32>
    %cst_114 = arith.constant dense<0.000000e+00> : vector<4x36xf32>
    %138 = tpu.matmul %135, %137, %cst_114 {dimension_numbers = #tpu.dot_dimension_numbers<[1], [0], [0], [1], [0, 0, 1, 1], [], []>} : vector<4x8xf32>, vector<8x36xf32>, vector<4x36xf32> -> vector<4x36xf32>
    %139 = arith.addf %23, %138 : vector<4x36xf32>
    %140 = vector.extract_strided_slice %134 {offsets = [4, 0], sizes = [4, 8], strides = [1, 1]} : vector<16x8xf32> to vector<4x8xf32>
    %c1_115 = arith.constant 1 : index
    %c0_116 = arith.constant 0 : index
    %c0_117 = arith.constant 0 : index
    %141 = vector.load %arg5[%c1_115, %c0_116, %c0_117] : memref<4x8x36xf32, #tpu.memory_space<vmem>>, vector<1x8x36xf32>
    %142 = vector.shape_cast %141 : vector<1x8x36xf32> to vector<8x36xf32>
    %cst_118 = arith.constant dense<0.000000e+00> : vector<4x36xf32>
    %143 = tpu.matmul %140, %142, %cst_118 {dimension_numbers = #tpu.dot_dimension_numbers<[1], [0], [0], [1], [0, 0, 1, 1], [], []>} : vector<4x8xf32>, vector<8x36xf32>, vector<4x36xf32> -> vector<4x36xf32>
    %144 = arith.addf %139, %143 : vector<4x36xf32>
    %145 = vector.extract_strided_slice %134 {offsets = [8, 0], sizes = [4, 8], strides = [1, 1]} : vector<16x8xf32> to vector<4x8xf32>
    %c2_119 = arith.constant 2 : index
    %c0_120 = arith.constant 0 : index
    %c0_121 = arith.constant 0 : index
    %146 = vector.load %arg5[%c2_119, %c0_120, %c0_121] : memref<4x8x36xf32, #tpu.memory_space<vmem>>, vector<1x8x36xf32>
    %147 = vector.shape_cast %146 : vector<1x8x36xf32> to vector<8x36xf32>
    %cst_122 = arith.constant dense<0.000000e+00> : vector<4x36xf32>
    %148 = tpu.matmul %145, %147, %cst_122 {dimension_numbers = #tpu.dot_dimension_numbers<[1], [0], [0], [1], [0, 0, 1, 1], [], []>} : vector<4x8xf32>, vector<8x36xf32>, vector<4x36xf32> -> vector<4x36xf32>
    %149 = arith.addf %144, %148 : vector<4x36xf32>
    %150 = vector.extract_strided_slice %134 {offsets = [12, 0], sizes = [4, 8], strides = [1, 1]} : vector<16x8xf32> to vector<4x8xf32>
    %c3_123 = arith.constant 3 : index
    %c0_124 = arith.constant 0 : index
    %c0_125 = arith.constant 0 : index
    %151 = vector.load %arg5[%c3_123, %c0_124, %c0_125] : memref<4x8x36xf32, #tpu.memory_space<vmem>>, vector<1x8x36xf32>
    %152 = vector.shape_cast %151 : vector<1x8x36xf32> to vector<8x36xf32>
    %cst_126 = arith.constant dense<0.000000e+00> : vector<4x36xf32>
    %153 = tpu.matmul %150, %152, %cst_126 {dimension_numbers = #tpu.dot_dimension_numbers<[1], [0], [0], [1], [0, 0, 1, 1], [], []>} : vector<4x8xf32>, vector<8x36xf32>, vector<4x36xf32> -> vector<4x36xf32>
    %154 = arith.addf %149, %153 : vector<4x36xf32>
    %c0_127 = arith.constant 0 : index
    %c198 = arith.constant 198 : index
    %155 = vector.load %arg13[%c0_127, %c198] : memref<4x384xf32, #tpu.memory_space<vmem>>, vector<4x36xf32>
    tpu.vector_store %arg13[%c0_127, %c198], %154 {strides = array<i32>} : memref<4x384xf32, #tpu.memory_space<vmem>>, vector<4x36xf32>,
    %156 = vector.extract_strided_slice %18 {offsets = [0, 48], sizes = [16, 8], strides = [1, 1]} : vector<16x64xf32> to vector<16x8xf32>
    %157 = vector.extract_strided_slice %156 {offsets = [0, 0], sizes = [4, 8], strides = [1, 1]} : vector<16x8xf32> to vector<4x8xf32>
    %c0_128 = arith.constant 0 : index
    %c0_129 = arith.constant 0 : index
    %c0_130 = arith.constant 0 : index
    %158 = vector.load %arg5[%c0_128, %c0_129, %c0_130] : memref<4x8x36xf32, #tpu.memory_space<vmem>>, vector<1x8x36xf32>
    %159 = vector.shape_cast %158 : vector<1x8x36xf32> to vector<8x36xf32>
    %cst_131 = arith.constant dense<0.000000e+00> : vector<4x36xf32>
    %160 = tpu.matmul %157, %159, %cst_131 {dimension_numbers = #tpu.dot_dimension_numbers<[1], [0], [0], [1], [0, 0, 1, 1], [], []>} : vector<4x8xf32>, vector<8x36xf32>, vector<4x36xf32> -> vector<4x36xf32>
    %161 = arith.addf %23, %160 : vector<4x36xf32>
    %162 = vector.extract_strided_slice %156 {offsets = [4, 0], sizes = [4, 8], strides = [1, 1]} : vector<16x8xf32> to vector<4x8xf32>
    %c1_132 = arith.constant 1 : index
    %c0_133 = arith.constant 0 : index
    %c0_134 = arith.constant 0 : index
    %163 = vector.load %arg5[%c1_132, %c0_133, %c0_134] : memref<4x8x36xf32, #tpu.memory_space<vmem>>, vector<1x8x36xf32>
    %164 = vector.shape_cast %163 : vector<1x8x36xf32> to vector<8x36xf32>
    %cst_135 = arith.constant dense<0.000000e+00> : vector<4x36xf32>
    %165 = tpu.matmul %162, %164, %cst_135 {dimension_numbers = #tpu.dot_dimension_numbers<[1], [0], [0], [1], [0, 0, 1, 1], [], []>} : vector<4x8xf32>, vector<8x36xf32>, vector<4x36xf32> -> vector<4x36xf32>
    %166 = arith.addf %161, %165 : vector<4x36xf32>
    %167 = vector.extract_strided_slice %156 {offsets = [8, 0], sizes = [4, 8], strides = [1, 1]} : vector<16x8xf32> to vector<4x8xf32>
    %c2_136 = arith.constant 2 : index
    %c0_137 = arith.constant 0 : index
    %c0_138 = arith.constant 0 : index
    %168 = vector.load %arg5[%c2_136, %c0_137, %c0_138] : memref<4x8x36xf32, #tpu.memory_space<vmem>>, vector<1x8x36xf32>
    %169 = vector.shape_cast %168 : vector<1x8x36xf32> to vector<8x36xf32>
    %cst_139 = arith.constant dense<0.000000e+00> : vector<4x36xf32>
    %170 = tpu.matmul %167, %169, %cst_139 {dimension_numbers = #tpu.dot_dimension_numbers<[1], [0], [0], [1], [0, 0, 1, 1], [], []>} : vector<4x8xf32>, vector<8x36xf32>, vector<4x36xf32> -> vector<4x36xf32>
    %171 = arith.addf %166, %170 : vector<4x36xf32>
    %172 = vector.extract_strided_slice %156 {offsets = [12, 0], sizes = [4, 8], strides = [1, 1]} : vector<16x8xf32> to vector<4x8xf32>
    %c3_140 = arith.constant 3 : index
    %c0_141 = arith.constant 0 : index
    %c0_142 = arith.constant 0 : index
    %173 = vector.load %arg5[%c3_140, %c0_141, %c0_142] : memref<4x8x36xf32, #tpu.memory_space<vmem>>, vector<1x8x36xf32>
    %174 = vector.shape_cast %173 : vector<1x8x36xf32> to vector<8x36xf32>
    %cst_143 = arith.constant dense<0.000000e+00> : vector<4x36xf32>
    %175 = tpu.matmul %172, %174, %cst_143 {dimension_numbers = #tpu.dot_dimension_numbers<[1], [0], [0], [1], [0, 0, 1, 1], [], []>} : vector<4x8xf32>, vector<8x36xf32>, vector<4x36xf32> -> vector<4x36xf32>
    %176 = arith.addf %171, %175 : vector<4x36xf32>
    %c0_144 = arith.constant 0 : index
    %c234 = arith.constant 234 : index
    %177 = vector.load %arg13[%c0_144, %c234] : memref<4x384xf32, #tpu.memory_space<vmem>>, vector<4x36xf32>
    tpu.vector_store %arg13[%c0_144, %c234], %176 {strides = array<i32>} : memref<4x384xf32, #tpu.memory_space<vmem>>, vector<4x36xf32>,
    %178 = vector.extract_strided_slice %18 {offsets = [0, 56], sizes = [16, 8], strides = [1, 1]} : vector<16x64xf32> to vector<16x8xf32>
    %179 = vector.extract_strided_slice %178 {offsets = [0, 0], sizes = [4, 8], strides = [1, 1]} : vector<16x8xf32> to vector<4x8xf32>
    %c0_145 = arith.constant 0 : index
    %c0_146 = arith.constant 0 : index
    %c0_147 = arith.constant 0 : index
    %180 = vector.load %arg5[%c0_145, %c0_146, %c0_147] : memref<4x8x36xf32, #tpu.memory_space<vmem>>, vector<1x8x36xf32>
    %181 = vector.shape_cast %180 : vector<1x8x36xf32> to vector<8x36xf32>
    %cst_148 = arith.constant dense<0.000000e+00> : vector<4x36xf32>
    %182 = tpu.matmul %179, %181, %cst_148 {dimension_numbers = #tpu.dot_dimension_numbers<[1], [0], [0], [1], [0, 0, 1, 1], [], []>} : vector<4x8xf32>, vector<8x36xf32>, vector<4x36xf32> -> vector<4x36xf32>
    %183 = arith.addf %23, %182 : vector<4x36xf32>
    %184 = vector.extract_strided_slice %178 {offsets = [4, 0], sizes = [4, 8], strides = [1, 1]} : vector<16x8xf32> to vector<4x8xf32>
    %c1_149 = arith.constant 1 : index
    %c0_150 = arith.constant 0 : index
    %c0_151 = arith.constant 0 : index
    %185 = vector.load %arg5[%c1_149, %c0_150, %c0_151] : memref<4x8x36xf32, #tpu.memory_space<vmem>>, vector<1x8x36xf32>
    %186 = vector.shape_cast %185 : vector<1x8x36xf32> to vector<8x36xf32>
    %cst_152 = arith.constant dense<0.000000e+00> : vector<4x36xf32>
    %187 = tpu.matmul %184, %186, %cst_152 {dimension_numbers = #tpu.dot_dimension_numbers<[1], [0], [0], [1], [0, 0, 1, 1], [], []>} : vector<4x8xf32>, vector<8x36xf32>, vector<4x36xf32> -> vector<4x36xf32>
    %188 = arith.addf %183, %187 : vector<4x36xf32>
    %189 = vector.extract_strided_slice %178 {offsets = [8, 0], sizes = [4, 8], strides = [1, 1]} : vector<16x8xf32> to vector<4x8xf32>
    %c2_153 = arith.constant 2 : index
    %c0_154 = arith.constant 0 : index
    %c0_155 = arith.constant 0 : index
    %190 = vector.load %arg5[%c2_153, %c0_154, %c0_155] : memref<4x8x36xf32, #tpu.memory_space<vmem>>, vector<1x8x36xf32>
    %191 = vector.shape_cast %190 : vector<1x8x36xf32> to vector<8x36xf32>
    %cst_156 = arith.constant dense<0.000000e+00> : vector<4x36xf32>
    %192 = tpu.matmul %189, %191, %cst_156 {dimension_numbers = #tpu.dot_dimension_numbers<[1], [0], [0], [1], [0, 0, 1, 1], [], []>} : vector<4x8xf32>, vector<8x36xf32>, vector<4x36xf32> -> vector<4x36xf32>
    %193 = arith.addf %188, %192 : vector<4x36xf32>
    %194 = vector.extract_strided_slice %178 {offsets = [12, 0], sizes = [4, 8], strides = [1, 1]} : vector<16x8xf32> to vector<4x8xf32>
    %c3_157 = arith.constant 3 : index
    %c0_158 = arith.constant 0 : index
    %c0_159 = arith.constant 0 : index
    %195 = vector.load %arg5[%c3_157, %c0_158, %c0_159] : memref<4x8x36xf32, #tpu.memory_space<vmem>>, vector<1x8x36xf32>
    %196 = vector.shape_cast %195 : vector<1x8x36xf32> to vector<8x36xf32>
    %cst_160 = arith.constant dense<0.000000e+00> : vector<4x36xf32>
    %197 = tpu.matmul %194, %196, %cst_160 {dimension_numbers = #tpu.dot_dimension_numbers<[1], [0], [0], [1], [0, 0, 1, 1], [], []>} : vector<4x8xf32>, vector<8x36xf32>, vector<4x36xf32> -> vector<4x36xf32>
    %198 = arith.addf %193, %197 : vector<4x36xf32>
    %c0_161 = arith.constant 0 : index
    %c270 = arith.constant 270 : index
    %199 = vector.load %arg13[%c0_161, %c270] : memref<4x384xf32, #tpu.memory_space<vmem>>, vector<4x36xf32>
    tpu.vector_store %arg13[%c0_161, %c270], %198 {strides = array<i32>} : memref<4x384xf32, #tpu.memory_space<vmem>>, vector<4x36xf32>,
    %c0_162 = arith.constant 0 : index
    %c0_163 = arith.constant 0 : index
    %200 = vector.load %arg13[%c0_162, %c0_163] : memref<4x384xf32, #tpu.memory_space<vmem>>, vector<4x288xf32>
    %c0_164 = arith.constant 0 : index
    %c0_165 = arith.constant 0 : index
    %201 = vector.load %arg14[%c0_164, %c0_165] : memref<4x384xf32, #tpu.memory_space<vmem>>, vector<4x288xf32>
    %c0_166 = arith.constant 0 : index
    %c1_167 = arith.constant 1 : index
    %202 = vector.load %arg13[%c0_166, %c1_167] : memref<4x384xf32, #tpu.memory_space<vmem>>, vector<4x288xf32>
    %c0_168 = arith.constant 0 : index
    %c1_169 = arith.constant 1 : index
    %203 = vector.load %arg14[%c0_168, %c1_169] : memref<4x384xf32, #tpu.memory_space<vmem>>, vector<4x288xf32>
    %c0_170 = arith.constant 0 : index
    %c2_171 = arith.constant 2 : index
    %204 = vector.load %arg13[%c0_170, %c2_171] : memref<4x384xf32, #tpu.memory_space<vmem>>, vector<4x288xf32>
    %c0_172 = arith.constant 0 : index
    %c2_173 = arith.constant 2 : index
    %205 = vector.load %arg14[%c0_172, %c2_173] : memref<4x384xf32, #tpu.memory_space<vmem>>, vector<4x288xf32>
    %c0_174 = arith.constant 0 : index
    %c18_175 = arith.constant 18 : index
    %206 = vector.load %arg13[%c0_174, %c18_175] : memref<4x384xf32, #tpu.memory_space<vmem>>, vector<4x288xf32>
    %c0_176 = arith.constant 0 : index
    %c18_177 = arith.constant 18 : index
    %207 = vector.load %arg14[%c0_176, %c18_177] : memref<4x384xf32, #tpu.memory_space<vmem>>, vector<4x288xf32>
    %c0_178 = arith.constant 0 : index
    %c19 = arith.constant 19 : index
    %208 = vector.load %arg13[%c0_178, %c19] : memref<4x384xf32, #tpu.memory_space<vmem>>, vector<4x288xf32>
    %c0_179 = arith.constant 0 : index
    %c19_180 = arith.constant 19 : index
    %209 = vector.load %arg14[%c0_179, %c19_180] : memref<4x384xf32, #tpu.memory_space<vmem>>, vector<4x288xf32>
    %c0_181 = arith.constant 0 : index
    %c20 = arith.constant 20 : index
    %210 = vector.load %arg13[%c0_181, %c20] : memref<4x384xf32, #tpu.memory_space<vmem>>, vector<4x288xf32>
    %c0_182 = arith.constant 0 : index
    %c20_183 = arith.constant 20 : index
    %211 = vector.load %arg14[%c0_182, %c20_183] : memref<4x384xf32, #tpu.memory_space<vmem>>, vector<4x288xf32>
    %c0_184 = arith.constant 0 : index
    %c36 = arith.constant 36 : index
    %212 = vector.load %arg13[%c0_184, %c36] : memref<4x384xf32, #tpu.memory_space<vmem>>, vector<4x288xf32>
    %c0_185 = arith.constant 0 : index
    %c36_186 = arith.constant 36 : index
    %213 = vector.load %arg14[%c0_185, %c36_186] : memref<4x384xf32, #tpu.memory_space<vmem>>, vector<4x288xf32>
    %c0_187 = arith.constant 0 : index
    %c37 = arith.constant 37 : index
    %214 = vector.load %arg13[%c0_187, %c37] : memref<4x384xf32, #tpu.memory_space<vmem>>, vector<4x288xf32>
    %c0_188 = arith.constant 0 : index
    %c37_189 = arith.constant 37 : index
    %215 = vector.load %arg14[%c0_188, %c37_189] : memref<4x384xf32, #tpu.memory_space<vmem>>, vector<4x288xf32>
    %c0_190 = arith.constant 0 : index
    %c38 = arith.constant 38 : index
    %216 = vector.load %arg13[%c0_190, %c38] : memref<4x384xf32, #tpu.memory_space<vmem>>, vector<4x288xf32>
    %c0_191 = arith.constant 0 : index
    %c38_192 = arith.constant 38 : index
    %217 = vector.load %arg14[%c0_191, %c38_192] : memref<4x384xf32, #tpu.memory_space<vmem>>, vector<4x288xf32>
    %218 = tpu.concatenate %200, %201, %202, %203, %204, %205, %206, %207, %208, %209, %210, %211, %212, %213, %214, %215 in 0 : vector<4x288xf32>, vector<4x288xf32>, vector<4x288xf32>, vector<4x288xf32>, vector<4x288xf32>, vector<4x288xf32>, vector<4x288xf32>, vector<4x288xf32>, vector<4x288xf32>, vector<4x288xf32>, vector<4x288xf32>, vector<4x288xf32>, vector<4x288xf32>, vector<4x288xf32>, vector<4x288xf32>, vector<4x288xf32> -> vector<64x288xf32>
    %219 = tpu.concatenate %216, %217 in 0 : vector<4x288xf32>, vector<4x288xf32> -> vector<8x288xf32>
    %220 = tpu.concatenate %218, %219 in 0 : vector<64x288xf32>, vector<8x288xf32> -> vector<72x288xf32>
    %c0_193 = arith.constant 0 : index
    %c0_194 = arith.constant 0 : index
    %221 = vector.load %arg8[%c0_193, %c0_194] : memref<4x72xf32, #tpu.memory_space<vmem>>, vector<4x72xf32>
    %cst_195 = arith.constant dense<0.000000e+00> : vector<4x288xf32>
    %222 = tpu.matmul %221, %220, %cst_195 {dimension_numbers = #tpu.dot_dimension_numbers<[1], [0], [0], [1], [0, 0, 1, 1], [], []>} : vector<4x72xf32>, vector<72x288xf32>, vector<4x288xf32> -> vector<4x288xf32>
    %c0_196 = arith.constant 0 : index
    %c0_197 = arith.constant 0 : index
    %223 = vector.load %arg9[%c0_196, %c0_197] : memref<4x1xf32, #tpu.memory_space<vmem>>, vector<4x1xf32>
    %224 = vector.broadcast %223 : vector<4x1xf32> to vector<4x288xf32>
    %225 = arith.addf %222, %224 : vector<4x288xf32>
    %cst_198 = arith.constant 0.000000e+00 : f32
    %226 = vector.broadcast %cst_198 : f32 to vector<4x288xf32>
    %227 = arith.maximumf %225, %226 : vector<4x288xf32>
    %c0_199 = arith.constant 0 : index
    %c0_200 = arith.constant 0 : index
    %228 = vector.load %arg7[%c0_199, %c0_200] : memref<1x288xf32, #tpu.memory_space<vmem>>, vector<1x288xf32>
    %229 = vector.broadcast %228 : vector<1x288xf32> to vector<4x288xf32>
    %230 = arith.mulf %227, %229 : vector<4x288xf32>
    %c0_201 = arith.constant 0 : index
    %c19_202 = arith.constant 19 : index
    %231 = vector.load %arg15[%c0_201, %c19_202] : memref<4x384xf32, #tpu.memory_space<vmem>>, vector<4x288xf32>
    tpu.vector_store %arg15[%c0_201, %c19_202], %230 {strides = array<i32>} : memref<4x384xf32, #tpu.memory_space<vmem>>, vector<4x288xf32>,
    %c0_203 = arith.constant 0 : index
    %c0_204 = arith.constant 0 : index
    %232 = vector.load %arg15[%c0_203, %c0_204] : memref<4x384xf32, #tpu.memory_space<vmem>>, vector<4x288xf32>
    %c0_205 = arith.constant 0 : index
    %c1_206 = arith.constant 1 : index
    %233 = vector.load %arg15[%c0_205, %c1_206] : memref<4x384xf32, #tpu.memory_space<vmem>>, vector<4x288xf32>
    %c0_207 = arith.constant 0 : index
    %c2_208 = arith.constant 2 : index
    %234 = vector.load %arg15[%c0_207, %c2_208] : memref<4x384xf32, #tpu.memory_space<vmem>>, vector<4x288xf32>
    %c0_209 = arith.constant 0 : index
    %c18_210 = arith.constant 18 : index
    %235 = vector.load %arg15[%c0_209, %c18_210] : memref<4x384xf32, #tpu.memory_space<vmem>>, vector<4x288xf32>
    %c0_211 = arith.constant 0 : index
    %c19_212 = arith.constant 19 : index
    %236 = vector.load %arg15[%c0_211, %c19_212] : memref<4x384xf32, #tpu.memory_space<vmem>>, vector<4x288xf32>
    %c0_213 = arith.constant 0 : index
    %c20_214 = arith.constant 20 : index
    %237 = vector.load %arg15[%c0_213, %c20_214] : memref<4x384xf32, #tpu.memory_space<vmem>>, vector<4x288xf32>
    %c0_215 = arith.constant 0 : index
    %c36_216 = arith.constant 36 : index
    %238 = vector.load %arg15[%c0_215, %c36_216] : memref<4x384xf32, #tpu.memory_space<vmem>>, vector<4x288xf32>
    %c0_217 = arith.constant 0 : index
    %c37_218 = arith.constant 37 : index
    %239 = vector.load %arg15[%c0_217, %c37_218] : memref<4x384xf32, #tpu.memory_space<vmem>>, vector<4x288xf32>
    %c0_219 = arith.constant 0 : index
    %c38_220 = arith.constant 38 : index
    %240 = vector.load %arg15[%c0_219, %c38_220] : memref<4x384xf32, #tpu.memory_space<vmem>>, vector<4x288xf32>
    %241 = tpu.concatenate %232, %233, %234, %235, %236, %237, %238, %239, %240 in 0 : vector<4x288xf32>, vector<4x288xf32>, vector<4x288xf32>, vector<4x288xf32>, vector<4x288xf32>, vector<4x288xf32>, vector<4x288xf32>, vector<4x288xf32>, vector<4x288xf32> -> vector<36x288xf32>
    %c0_221 = arith.constant 0 : index
    %c0_222 = arith.constant 0 : index
    %242 = vector.load %arg10[%c0_221, %c0_222] : memref<4x36xf32, #tpu.memory_space<vmem>>, vector<4x36xf32>
    %cst_223 = arith.constant dense<0.000000e+00> : vector<4x288xf32>
    %243 = tpu.matmul %242, %241, %cst_223 {dimension_numbers = #tpu.dot_dimension_numbers<[1], [0], [0], [1], [0, 0, 1, 1], [], []>} : vector<4x36xf32>, vector<36x288xf32>, vector<4x288xf32> -> vector<4x288xf32>
    %c0_224 = arith.constant 0 : index
    %c0_225 = arith.constant 0 : index
    %244 = vector.load %arg11[%c0_224, %c0_225] : memref<4x1xf32, #tpu.memory_space<vmem>>, vector<4x1xf32>
    %245 = vector.broadcast %244 : vector<4x1xf32> to vector<4x288xf32>
    %246 = arith.addf %243, %245 : vector<4x288xf32>
    %cst_226 = arith.constant 0.000000e+00 : f32
    %247 = vector.broadcast %cst_226 : f32 to vector<4x288xf32>
    %248 = arith.maximumf %246, %247 : vector<4x288xf32>
    %c0_227 = arith.constant 0 : index
    %c0_228 = arith.constant 0 : index
    %c0_229 = arith.constant 0 : index
    %249 = vector.load %arg12[%c0_227, %c0_228, %c0_229] : memref<1x4x288xf32, #tpu.memory_space<vmem>>, vector<1x4x288xf32>
    %250 = vector.shape_cast %249 : vector<1x4x288xf32> to vector<4x288xf32>
    %251 = vector.shape_cast %248 : vector<4x288xf32> to vector<1x4x288xf32>
    tpu.vector_store %arg12[%c0_227, %c0_228, %c0_229], %251 {strides = array<i32>} : memref<1x4x288xf32, #tpu.memory_space<vmem>>, vector<1x4x288xf32>,
    return
  }
  func.func @transform_0(%arg0: i32) -> (i32, i32, i32) {
    %c0_i32 = arith.constant 0 : i32
    %c0_i32_0 = arith.constant 0 : i32
    %c0_i32_1 = arith.constant 0 : i32
    return %arg0, %c0_i32, %c0_i32_0 : i32, i32, i32
  }
  func.func @transform_1(%arg0: i32) -> (i32, i32, i32) {
    %c0_i32 = arith.constant 0 : i32
    %c0_i32_0 = arith.constant 0 : i32
    %c0_i32_1 = arith.constant 0 : i32
    return %arg0, %c0_i32, %c0_i32_0 : i32, i32, i32
  }
  func.func @transform_2(%arg0: i32) -> (i32, i32) {
    %c0_i32 = arith.constant 0 : i32
    %c0_i32_0 = arith.constant 0 : i32
    %c0_i32_1 = arith.constant 0 : i32
    return %c0_i32, %c0_i32_0 : i32, i32
  }
  func.func @transform_3(%arg0: i32) -> (i32, i32) {
    %c0_i32 = arith.constant 0 : i32
    %c0_i32_0 = arith.constant 0 : i32
    %c0_i32_1 = arith.constant 0 : i32
    return %c0_i32, %c0_i32_0 : i32, i32
  }
  func.func @transform_4(%arg0: i32) -> (i32, i32, i32) {
    %c0_i32 = arith.constant 0 : i32
    %c0_i32_0 = arith.constant 0 : i32
    %c0_i32_1 = arith.constant 0 : i32
    %c0_i32_2 = arith.constant 0 : i32
    return %c0_i32, %c0_i32_0, %c0_i32_1 : i32, i32, i32
  }
  func.func @transform_5(%arg0: i32) -> (i32, i32) {
    %c0_i32 = arith.constant 0 : i32
    %c0_i32_0 = arith.constant 0 : i32
    %c0_i32_1 = arith.constant 0 : i32
    return %c0_i32, %c0_i32_0 : i32, i32
  }
  func.func @transform_6(%arg0: i32) -> (i32, i32) {
    %c0_i32 = arith.constant 0 : i32
    %c0_i32_0 = arith.constant 0 : i32
    %c0_i32_1 = arith.constant 0 : i32
    return %c0_i32, %c0_i32_0 : i32, i32
  }
  func.func @transform_7(%arg0: i32) -> (i32, i32) {
    %c0_i32 = arith.constant 0 : i32
    %c0_i32_0 = arith.constant 0 : i32
    %c0_i32_1 = arith.constant 0 : i32
    return %c0_i32, %c0_i32_0 : i32, i32
  }
  func.func @transform_8(%arg0: i32) -> (i32, i32) {
    %c0_i32 = arith.constant 0 : i32
    %c0_i32_0 = arith.constant 0 : i32
    %c0_i32_1 = arith.constant 0 : i32
    return %c0_i32, %c0_i32_0 : i32, i32
  }
  func.func @transform_9(%arg0: i32) -> (i32, i32) {
    %c0_i32 = arith.constant 0 : i32
    %c0_i32_0 = arith.constant 0 : i32
    %c0_i32_1 = arith.constant 0 : i32
    return %c0_i32, %c0_i32_0 : i32, i32
  }
  func.func @transform_10(%arg0: i32) -> (i32, i32) {
    %c0_i32 = arith.constant 0 : i32
    %c0_i32_0 = arith.constant 0 : i32
    %c0_i32_1 = arith.constant 0 : i32
    return %c0_i32, %c0_i32_0 : i32, i32
  }
  func.func @transform_11(%arg0: i32) -> (i32, i32, i32) {
    %c0_i32 = arith.constant 0 : i32
    %c0_i32_0 = arith.constant 0 : i32
    %c0_i32_1 = arith.constant 0 : i32
    return %arg0, %c0_i32, %c0_i32_0 : i32, i32, i32
  }
}

</mosaic_0001>

<bundles_post_ra>
// kernel: dec_block.1
= control target key start
LH: loop header
LB: loop body
LE: loop exit
PB: predicated region body
PF: predicated region fallthrough
CT: control target
= control target key end

     0   :  { %s4501_s17 = smov 0   ;;  %s4956_s0 = inlined_call_operand.vmem [shape: f32[2,8,64], index: 0, kind: input, shape index: {}]   ;;  %s4957_s1 = inlined_call_operand.vmem [shape: f32[2,4,288], index: 1, kind: input, shape index: {}]   ;;  %s4958_s2 = inlined_call_operand.vmem [shape: f32[16,8], index: 2, kind: input, shape index: {}]   ;;  %s4959_s3 = inlined_call_operand.vmem [shape: f32[4,1], index: 3, kind: input, shape index: {}]   ;;  %s4960_s4 = inlined_call_operand.vmem [shape: f32[4,8,36], index: 4, kind: input, shape index: {}]   ;;  %s4961_s5 = inlined_call_operand.vmem [shape: f32[1,36], index: 5, kind: input, shape index: {}]   ;;  %s4962_s6 = inlined_call_operand.vmem [shape: f32[1,288], index: 6, kind: input, shape index: {}]   ;;  %s4963_s7 = inlined_call_operand.vmem [shape: f32[4,72], index: 7, kind: input, shape index: {}]   ;;  %s4964_s8 = inlined_call_operand.vmem [shape: f32[4,1], index: 8, kind: input, shape index: {}]   ;;  %s4965_s9 = inlined_call_operand.vmem [shape: f32[4,36], index: 9, kind: input, shape index: {}]   ;;  %s4966_s10 = inlined_call_operand.vmem [shape: f32[4,1], index: 10, kind: input, shape index: {}]   ;;  %s4967_s11 = inlined_call_operand.vmem [shape: f32[2,4,288], index: 11, kind: output, shape index: {}]  }
   0x1 LB: > { %s3770_s18 = sadd.s32 4294967295, %s4413_s17   ;;  %p3774_p0 = scmp.ge.s32.totalorder %s4413_s17, 1  ;;  %s4413_s17 = sphi %s4501_s17, %s21_s17  }
   0x2   : > { %p346_p1 = scmp.lt.s32.totalorder %s4413_s17, 3 }
   0x4   : > { %p347_p2 = pnand %p3774_p0, %p346_p1 }
   0x5   : > { %p390_p3 = scmp.lt.s32.totalorder (!%p347_p2), %s3770_s18, 1  ;;  %v434_v0 = vld [vmem:[%s4958_s2] sm:$0xff] (!%p347_p2)  ;;  %vm437_vm0 = vcmask (!%p347_p2), 64512   ;;  %v435_v2 = vld [vmem:[%s4958_s2 + $0x8] sm:$0xff] (!%p347_p2)  ;;  %v4415_v3 = vmov (!%p347_p2), 0.0   ;;  %vm4416_vm1 = vmmov (!%p347_p2), 0  }
   0x6   : > { %350 = sbr.rel (%p347_p2) target bundleno = 1660 (0x67c), region = 64  ;;  %3931 = vmatprep.mubr.msk.f32.mxu0 (!%p347_p2), %vm437_vm0, %v434_v0  ;;  %3934 = vmatprep.subr.mxu1 (!%p347_p2), %v4415_v3  ;;  %v4527_v4 = vld [vmem:[%s4960_s4] sm:$0xff] (!%p347_p2)  ;;  %v4417_v5 = vmov (!%p347_p2), 0   ;;  %v4541_v7 = vld [vmem:[%s4960_s4 + $0x8] sm:$0xff] (!%p347_p2)  ;;  %s4418_s12 = smov (!%p347_p2), 120   ;;  %v4551_v11 = vld [vmem:[%s4960_s4 + $0x10] sm:$0xff] (!%p347_p2) }
   0x7   : > { %3935 = vmatpush3.msra.mxu1 (!%p347_p2), %v4527_v4  ;;  %3936 = vmatprep.mubr.msk.f32.mxu1 (!%p347_p2), %vm4416_vm1, %v4415_v3  ;;  %s4419_s13 = smov (!%p347_p2), 112   ;;  %s4420_s16 = smov (!%p347_p2), 104   ;;  %v4561_v12 = vld [vmem:[%s4960_s4 + $0x18] sm:$0xff] (!%p347_p2)  ;;  %v519_v13 = vld [vmem:[%s4959_s3] sm:$0xf] (!%p347_p2)  ;;  %vm404_vm2 = vcmask (!%p347_p2), 142336  }
   0x8   : > { %3939 = vmatprep.subr.mxu1 (!%p347_p2), %v4415_v3  ;;  %4261 = vset.pattern.permute.xlu0 (!%p347_p2), %v4417_v5  ;;  %s4422_s22 = smov (!%p347_p2), 88   ;;  %s4423_s23 = smov (!%p347_p2), 80   ;;  %405 = vst.msk [vmem:[#allocation2] sm:$0xf] (!%p347_p2), %vm404_vm2, %v4415_v3  ;;  %408 = vst.msk [vmem:[#allocation3] sm:$0xf] (!%p347_p2), %vm404_vm2, %v4415_v3 }
   0x9   : > { %v3780_v43 = vld [vmem:[%s4961_s5] ss:$0 sm:$0xff] (!%p347_p2)  ;;  %vm423_vm3 = vcmask (!%p347_p2), 146432   ;;  %vm428_vm4 = vcmask (!%p347_p2), 1043600   ;;  %vm429_vm5 = vcmask (!%p347_p2), 1047556   ;;  %vm840_vm7 = vcmask (!%p347_p2), 437392  }
   0xa   : > { %vm430_vm6 = vmor (!%p347_p2), %vm429_vm5, %vm428_vm4  ;;  %s4426_s15 = smov (!%p347_p2), 54   ;;  %s4428_s19 = smov (!%p347_p2), 126   ;;  %vm406_vm8 = vcmask (!%p347_p2), 1043856   ;;  %vm1150_vm9 = vcmask (!%p347_p2), 732592   ;;  %vm1460_vm10 = vcmask (!%p347_p2), 1027792   ;;  %vm1773_vm11 = vcmask (!%p347_p2), 1044464  }
   0xb   : > { %s4429_s20 = smov (!%p347_p2), 34   ;;  %407 = vst.msk [vmem:[#allocation2 + $0x8] sm:$0xf] (!%p347_p2), %vm406_vm8, %v4415_v3  ;;  %409 = vst.msk [vmem:[#allocation3 + $0x8] sm:$0xf] (!%p347_p2), %vm406_vm8, %v4415_v3  ;;  %vm1774_vm12 = vcmask (!%p347_p2), 277508  }
   0xc   : > { %vm1770_vm13 = vcmask (!%p347_p2), 1031168   ;;  %vm1775_vm14 = vmor (!%p347_p2), %vm1774_vm12, %vm1773_vm11  ;;  %vm2085_vm15 = vcmask (!%p347_p2), 568592   ;;  %vm2708_vm2 = vcmask (!%p347_p2), 1044304   ;;  %vm2709_vm4 = vcmask (!%p347_p2), 113668   ;;  %s4434_s25 = smov (!%p347_p2), 110   ;;  %s4435_s26 = smov (!%p347_p2), 109  }
   0xd   : > { %s4969_s18 = smov (!%p390_p3, %s3770_s18), 1  ;;  %vm432_vm8 = vcmask 404480   ;;  %s4436_s28 = smov 108   ;;  %vm3087_vm11 = vcmask 900096   ;;  %vm3110_vm12 = vcmask 891904  }
   0xe   : > { %s3775_s21 = sshll.u32 %s4969_s18, 3  ;;  %s4226_s27 = smul.u32 12, %s4969_s18 }
   0xf   : > { %s393_s24 = scalar_lea.vmem %s4956_s0, %s3775_s21  ;;  %s4421_s21 = smov 96  }
  0x10   : > { %v436_v1 = vld [vmem:[%s393_s24] sm:$0xff]  ;;  %s4424_s24 = smov 72   ;;  %s4582_s30 = scalar_lea.vmem %s4957_s1, %s4226_s27 }
  0x11   : > { %3929 = vmatprep.subr.mxu0 %v436_v1  ;;  %v414_v15 = vld [vmem:[%s4582_s30] sm:$0xff]  ;;  %s4437_s29 = smov 92  }
  0x12   : > { %3930 = vmatpush3.msra.mxu0 %v436_v1 }
  0x13   : > { %3932 = vmatmul.mubr.msk.f32.vlgmr.msra.gmra.mrb[0].mxu0 %vm437_vm0, %v435_v2  ;;  %3954 = vmatprep.subr.mxu0 %v4415_v3 }
  0x14   : > { %3955 = vmatpush3.msra.mxu0 %v4527_v4  ;;  %3956 = vmatprep.mubr.msk.f32.mxu0 %vm4416_vm1, %v4415_v3 }
  0x15   : > { %3959 = vmatprep.subr.mxu0 %v4415_v3 }
  0xe6   : > { %v3933_v6 = vpop.f32.mrb[0].mxu0 }
  0xe7   : > { %995 = vrot.lane.b32.xlu1 %v3933_v6, %s4418_s12  ;;  %v510_v8 = vpop.f32.mrb[1].mxu0  ;;  %v762_v10 = vrot.slane %v3933_v6, 4 }
  0xe8   : > { %843 = vrot.lane.b32.xlu0 %v510_v8, %s4418_s12  ;;  %3937 = vmatmul.mubr.msk.f32.vlgmr.msra.gmra.mrb[0].mxu1 %vm437_vm0, %v510_v8  ;;  %v610_v9 = vrot.slane %v510_v8, 4 }
  0xe9   : > { %3940 = vmatpush3.msra.mxu1 %v4541_v7  ;;  %3941 = vmatprep.mubr.msk.f32.mxu1 %vm4416_vm1, %v4415_v3 }
  0xea   : > { %3944 = vmatprep.subr.mxu1 %v4415_v3 }
  0xeb   : > { %1153 = vrot.lane.b32.xlu1 %v510_v8, %s4419_s13 }
  0xec   : > { %919 = vrot.lane.b32.xlu0 %v610_v9, %s4418_s12 }
  0xef   : > { %1463 = vrot.lane.b32.xlu1 %v510_v8, %s4420_s16 }
  0xf0   : > { %1071 = vrot.lane.b32.xlu0 %v762_v10, %s4418_s12  ;;  %3942 = vmatmul.mubr.msk.f32.vlgmr.msra.gmra.mrb[0].mxu1 %vm437_vm0, %v610_v9  ;;  %s4425_s12 = smov 18  }
  0xf1   : > { %3945 = vmatpush3.msra.mxu1 %v4551_v11  ;;  %3946 = vmatprep.mubr.msk.f32.mxu1 %vm4416_vm1, %v4415_v3 }
  0xf2   : > { %3949 = vmatprep.subr.mxu1 %v4415_v3 }
  0xf3   : > { %1539 = vrot.lane.b32.xlu1 %v610_v9, %s4420_s16 }
  0xf4   : > { %1229 = vrot.lane.b32.xlu0 %v610_v9, %s4419_s13 }
  0xf7   : > { %1615 = vrot.lane.b32.xlu1 %v3933_v6, %s4420_s16 }
  0xf8   : > { %1305 = vrot.lane.b32.xlu0 %v3933_v6, %s4419_s13  ;;  %3947 = vmatmul.mubr.msk.f32.vlgmr.msra.gmra.mrb[0].mxu1 %vm437_vm0, %v3933_v6 }
  0xf9   : > { %3950 = vmatpush3.msra.mxu1 %v4561_v12  ;;  %3951 = vmatprep.mubr.msk.f32.mxu1 %vm4416_vm1, %v4415_v3 }
  0xfa   : > { %3974 = vmatprep.subr.mxu1 %v4415_v3 }
  0xfb   : > { %1778 = vrot.lane.b32.xlu1 %v510_v8, %s4421_s21 }
  0xfc   : > { %1381 = vrot.lane.b32.xlu0 %v762_v10, %s4419_s13 }
  0xff   : > { %2088 = vrot.lane.b32.xlu1 %v510_v8, %s4422_s22 }
 0x100   : > { %1691 = vrot.lane.b32.xlu0 %v762_v10, %s4420_s16  ;;  %3952 = vmatmul.mubr.msk.f32.vlgmr.msra.gmra.mrb[0].mxu1 %vm437_vm0, %v762_v10  ;;  %s4427_s16 = smov 90  }
 0x101   : > { %3975 = vmatpush3.msra.mxu1 %v4527_v4  ;;  %3976 = vmatprep.mubr.msk.f32.mxu1 %vm4416_vm1, %v4415_v3 }
 0x102   : > { %3979 = vmatprep.subr.mxu1 %v4415_v3 }
 0x103   : > { %2164 = vrot.lane.b32.xlu1 %v610_v9, %s4422_s22 }
 0x104   : > { %1854 = vrot.lane.b32.xlu0 %v610_v9, %s4421_s21 }
 0x107   : > { %2240 = vrot.lane.b32.xlu1 %v3933_v6, %s4422_s22 }
 0x108   : > { %1930 = vrot.lane.b32.xlu0 %v3933_v6, %s4421_s21 }
 0x10b   : > { %2398 = vrot.lane.b32.xlu1 %v510_v8, %s4423_s23 }
 0x10c   : > { %2006 = vrot.lane.b32.xlu0 %v762_v10, %s4421_s21  ;;  %s4430_s21 = smov 70  }
 0x10f   : > { %2713 = vrot.lane.b32.xlu1 %v510_v8, %s4424_s24  ;;  %v415_v8 = vld [vmem:[%s4582_s30 + $0x8] sm:$0xf]  ;;  %s4439_s30 = smov 91  }
 0x110   : > { %2316 = vrot.lane.b32.xlu0 %v762_v10, %s4422_s22  ;;  %s4431_s22 = smov 106  }
 0x113   : > { %2789 = vrot.lane.b32.xlu1 %v610_v9, %s4424_s24 }
 0x114   : > { %2474 = vrot.lane.b32.xlu0 %v610_v9, %s4423_s23 }
 0x117   : > { %2865 = vrot.lane.b32.xlu1 %v3933_v6, %s4424_s24 }
 0x118   : > { %2550 = vrot.lane.b32.xlu0 %v3933_v6, %s4423_s23 }
 0x11b   : > { %2941 = vrot.lane.b32.xlu1 %v762_v10, %s4424_s24  ;;  %s4433_s24 = smov 127  }
 0x11c   : > { %2626 = vrot.lane.b32.xlu0 %v762_v10, %s4423_s23  ;;  %s4432_s23 = smov 14  }
 0x120   : > { %523 = vperm.xlu0 %4261, %v519_v13  }
 0x124   : > { %418 = vrot.lane.b32.xlu0 %v414_v15, %s4425_s12 }
 0x159   : > { %v996_v14 = vpop.permute.xlu1 %995 }
 0x15a   : > { %v844_v16 = vpop.permute.xlu0 %843 }
 0x15b   : > { %3957 = vmatmul.mubr.msk.f32.vlgmr.msra.gmra.mrb[2].mxu0 %vm437_vm0, %v844_v16 }
 0x15c   : > { %3960 = vmatpush3.msra.mxu0 %v4541_v7  ;;  %3961 = vmatprep.mubr.msk.f32.mxu0 %vm4416_vm1, %v4415_v3 }
 0x15d   : > { %v1154_v17 = vpop.permute.xlu1 %1153  ;;  %3964 = vmatprep.subr.mxu0 %v4415_v3 }
 0x15e   : > { %v920_v18 = vpop.permute.xlu0 %919  ;;  %3977 = vmatmul.mubr.msk.f32.vlgmr.msra.gmra.mrb[2].mxu1 %vm437_vm0, %v1154_v17 }
 0x15f   : > { %3980 = vmatpush3.msra.mxu1 %v4541_v7  ;;  %3981 = vmatprep.mubr.msk.f32.mxu1 %vm4416_vm1, %v4415_v3 }
 0x160   : > { %3984 = vmatprep.subr.mxu1 %v4415_v3 }
 0x161   : > { %v1464_v21 = vpop.permute.xlu1 %1463 }
 0x162   : > { %v1072_v19 = vpop.permute.xlu0 %1071 }
 0x163   : > { %3962 = vmatmul.mubr.msk.f32.vlgmr.msra.gmra.mrb[2].mxu0 %vm437_vm0, %v920_v18 }
 0x164   : > { %3965 = vmatpush3.msra.mxu0 %v4551_v11  ;;  %3966 = vmatprep.mubr.msk.f32.mxu0 %vm4416_vm1, %v4415_v3 }
 0x165   : > { %3969 = vmatprep.subr.mxu0 %v4415_v3  ;;  %v1540_v22 = vpop.permute.xlu1 %1539 }
 0x166   : > { %v1230_v20 = vpop.permute.xlu0 %1229 }
 0x167   : > { %3982 = vmatmul.mubr.msk.f32.vlgmr.msra.gmra.mrb[2].mxu1 %vm437_vm0, %v1230_v20 }
 0x168   : > { %3985 = vmatpush3.msra.mxu1 %v4551_v11  ;;  %3986 = vmatprep.mubr.msk.f32.mxu1 %vm4416_vm1, %v4415_v3 }
 0x169   : > { %3989 = vmatprep.subr.mxu1 %v4415_v3  ;;  %v1616_v24 = vpop.permute.xlu1 %1615 }
 0x16a   : > { %v1306_v23 = vpop.permute.xlu0 %1305 }
 0x16b   : > { %3967 = vmatmul.mubr.msk.f32.vlgmr.msra.gmra.mrb[2].mxu0 %vm437_vm0, %v996_v14 }
 0x16c   : > { %3970 = vmatpush3.msra.mxu0 %v4561_v12  ;;  %3971 = vmatprep.mubr.msk.f32.mxu0 %vm4416_vm1, %v4415_v3 }
 0x16d   : > { %3994 = vmatprep.subr.mxu0 %v4415_v3  ;;  %v1779_v26 = vpop.permute.xlu1 %1778 }
 0x16e   : > { %v1382_v25 = vpop.permute.xlu0 %1381 }
 0x16f   : > { %3987 = vmatmul.mubr.msk.f32.vlgmr.msra.gmra.mrb[2].mxu1 %vm437_vm0, %v1306_v23 }
 0x170   : > { %3990 = vmatpush3.msra.mxu1 %v4561_v12  ;;  %3991 = vmatprep.mubr.msk.f32.mxu1 %vm4416_vm1, %v4415_v3 }
 0x171   : > { %4014 = vmatprep.subr.mxu1 %v4415_v3  ;;  %v2089_v29 = vpop.permute.xlu1 %2088 }
 0x172   : > { %v1692_v27 = vpop.permute.xlu0 %1691 }
 0x173   : > { %3972 = vmatmul.mubr.msk.f32.vlgmr.msra.gmra.mrb[2].mxu0 %vm437_vm0, %v1072_v19 }
 0x174   : > { %3995 = vmatpush3.msra.mxu0 %v4527_v4  ;;  %3996 = vmatprep.mubr.msk.f32.mxu0 %vm4416_vm1, %v4415_v3 }
 0x175   : > { %3999 = vmatprep.subr.mxu0 %v4415_v3  ;;  %v2165_v30 = vpop.permute.xlu1 %2164 }
 0x176   : > { %v1855_v28 = vpop.permute.xlu0 %1854 }
 0x177   : > { %3992 = vmatmul.mubr.msk.f32.vlgmr.msra.gmra.mrb[2].mxu1 %vm437_vm0, %v1382_v25  ;;  %3997 = vmatmul.mubr.msk.f32.vlgmr.msra.gmra.mrb[4].mxu0 %vm437_vm0, %v1464_v21 }
 0x178   : > { %4015 = vmatpush3.msra.mxu1 %v4527_v4  ;;  %4000 = vmatpush3.msra.mxu0 %v4541_v7 }
 0x179   : > { %4016 = vmatprep.mubr.msk.f32.mxu1 %vm4416_vm1, %v4415_v3  ;;  %4019 = vmatprep.subr.mxu1 %v4415_v3  ;;  %v2241_v32 = vpop.permute.xlu1 %2240 }
 0x17a   : > { %4001 = vmatprep.mubr.msk.f32.mxu0 %vm4416_vm1, %v4415_v3  ;;  %4004 = vmatprep.subr.mxu0 %v4415_v3  ;;  %v1931_v31 = vpop.permute.xlu0 %1930 }
 0x17b   : > { %4017 = vmatmul.mubr.msk.f32.vlgmr.msra.gmra.mrb[4].mxu1 %vm437_vm0, %v1779_v26 }
 0x17c   : > { %4020 = vmatpush3.msra.mxu1 %v4541_v7  ;;  %4021 = vmatprep.mubr.msk.f32.mxu1 %vm4416_vm1, %v4415_v3 }
 0x17d   : > { %4024 = vmatprep.subr.mxu1 %v4415_v3  ;;  %v2399_v34 = vpop.permute.xlu1 %2398 }
 0x17e   : > { %v2007_v33 = vpop.permute.xlu0 %2006 }
 0x17f   : > { %4002 = vmatmul.mubr.msk.f32.vlgmr.msra.gmra.mrb[4].mxu0 %vm437_vm0, %v1540_v22 }
 0x180   : > { %4005 = vmatpush3.msra.mxu0 %v4551_v11  ;;  %4006 = vmatprep.mubr.msk.f32.mxu0 %vm4416_vm1, %v4415_v3 }
 0x181   : > { %4009 = vmatprep.subr.mxu0 %v4415_v3  ;;  %v2714_v38 = vpop.permute.xlu1 %2713 }
 0x182   : > { %v2317_v35 = vpop.permute.xlu0 %2316 }
 0x183   : > { %4022 = vmatmul.mubr.msk.f32.vlgmr.msra.gmra.mrb[4].mxu1 %vm437_vm0, %v1855_v28 }
 0x184   : > { %4025 = vmatpush3.msra.mxu1 %v4551_v11  ;;  %4026 = vmatprep.mubr.msk.f32.mxu1 %vm4416_vm1, %v4415_v3 }
 0x185   : > { %4029 = vmatprep.subr.mxu1 %v4415_v3  ;;  %v2790_v40 = vpop.permute.xlu1 %2789 }
 0x186   : > { %v2475_v36 = vpop.permute.xlu0 %2474 }
 0x187   : > { %4007 = vmatmul.mubr.msk.f32.vlgmr.msra.gmra.mrb[4].mxu0 %vm437_vm0, %v1616_v24 }
 0x188   : > { %4010 = vmatpush3.msra.mxu0 %v4561_v12  ;;  %4011 = vmatprep.mubr.msk.f32.mxu0 %vm4416_vm1, %v4415_v3 }
 0x189   : > { %4034 = vmatprep.subr.mxu0 %v4415_v3  ;;  %v2866_v41 = vpop.permute.xlu1 %2865 }
 0x18a   : > { %v2551_v37 = vpop.permute.xlu0 %2550 }
 0x18b   : > { %4027 = vmatmul.mubr.msk.f32.vlgmr.msra.gmra.mrb[4].mxu1 %vm437_vm0, %v1931_v31 }
 0x18c   : > { %4030 = vmatpush3.msra.mxu1 %v4561_v12  ;;  %4031 = vmatprep.mubr.msk.f32.mxu1 %vm4416_vm1, %v4415_v3 }
 0x18d   : > { %4054 = vmatprep.subr.mxu1 %v4415_v3  ;;  %v2942_v42 = vpop.permute.xlu1 %2941 }
 0x18e   : > { %v2627_v39 = vpop.permute.xlu0 %2626 }
 0x18f   : > { %4012 = vmatmul.mubr.msk.f32.vlgmr.msra.gmra.mrb[4].mxu0 %vm437_vm0, %v1692_v27 }
 0x190   : > { %4035 = vmatpush3.msra.mxu0 %v4527_v4  ;;  %4036 = vmatprep.mubr.msk.f32.mxu0 %vm4416_vm1, %v4415_v3 }
 0x191   : > { %4039 = vmatprep.subr.mxu0 %v4415_v3 }
 0x193   : > { %4032 = vmatmul.mubr.msk.f32.vlgmr.msra.gmra.mrb[4].mxu1 %vm437_vm0, %v2007_v33  ;;  %4037 = vmatmul.mubr.msk.f32.vlgmr.msra.gmra.mrb[6].mxu0 %vm437_vm0, %v2089_v29 }
 0x194   : > { %4055 = vmatpush3.msra.mxu1 %v4527_v4  ;;  %4040 = vmatpush3.msra.mxu0 %v4541_v7 }
 0x195   : > { %4056 = vmatprep.mubr.msk.f32.mxu1 %vm4416_vm1, %v4415_v3  ;;  %4059 = vmatprep.subr.mxu1 %v4415_v3 }
 0x196   : > { %4041 = vmatprep.mubr.msk.f32.mxu0 %vm4416_vm1, %v4415_v3  ;;  %4044 = vmatprep.subr.mxu0 %v4415_v3 }
 0x197   : > { %4057 = vmatmul.mubr.msk.f32.vlgmr.msra.gmra.mrb[6].mxu1 %vm437_vm0, %v2399_v34  ;;  %v4438_v34 = vmov 0.0|0.0  }
 0x198   : > { %4060 = vmatpush3.msra.mxu1 %v4541_v7  ;;  %4061 = vmatprep.mubr.msk.f32.mxu1 %vm4416_vm1, %v4415_v3 }
 0x199   : > { %4064 = vmatprep.subr.mxu1 %v4415_v3 }
 0x19b   : > { %4042 = vmatmul.mubr.msk.f32.vlgmr.msra.gmra.mrb[6].mxu0 %vm437_vm0, %v2165_v30 }
 0x19c   : > { %4045 = vmatpush3.msra.mxu0 %v4551_v11  ;;  %4046 = vmatprep.mubr.msk.f32.mxu0 %vm4416_vm1, %v4415_v3 }
 0x19d   : > { %4049 = vmatprep.subr.mxu0 %v4415_v3 }
 0x19f   : > { %4062 = vmatmul.mubr.msk.f32.vlgmr.msra.gmra.mrb[6].mxu1 %vm437_vm0, %v2475_v36  ;;  %v524_v44 = vpop.permute.xlu0 %523 }
 0x1a0   : > { %4065 = vmatpush3.msra.mxu1 %v4551_v11  ;;  %4066 = vmatprep.mubr.msk.f32.mxu1 %vm4416_vm1, %v4415_v3  ;;  %v532_v45 = vmul.f32 %v3780_v43, %v524_v44 }
 0x1a1   : > { %4069 = vmatprep.subr.mxu1 %v4415_v3 }
 0x1a3   : > { %4047 = vmatmul.mubr.msk.f32.vlgmr.msra.gmra.mrb[6].mxu0 %vm437_vm0, %v2241_v32  ;;  %v4725_v49 = vpop.permute.xlu0 %418 }
 0x1a4   : > { %4050 = vmatpush3.msra.mxu0 %v4561_v12  ;;  %4051 = vmatprep.mubr.msk.f32.mxu0 %vm4416_vm1, %v4415_v3  ;;  %v422_v50 = vrot.slane %v4725_v49, 4 }
 0x1a5   : > { %4074 = vmatprep.subr.mxu0 %v4415_v3 }
 0x1a6   : > { %v424_v51 = vsel %vm423_vm3, %v422_v50, %v4725_v49 }
 0x1a7   : > { %4067 = vmatmul.mubr.msk.f32.vlgmr.msra.gmra.mrb[6].mxu1 %vm437_vm0, %v2551_v37  ;;  %431 = vst.msk [vmem:[#allocation3] sm:$0xff] %vm430_vm6, %v424_v51  ;;  %vm2705_vm6 = vcmask 867328  }
 0x1a8   : > { %4070 = vmatpush3.msra.mxu1 %v4561_v12  ;;  %4071 = vmatprep.mubr.msk.f32.mxu1 %vm4416_vm1, %v4415_v3 }
 0x1ab   : > { %4052 = vmatmul.mubr.msk.f32.vlgmr.msra.gmra.mrb[6].mxu0 %vm437_vm0, %v2317_v35 }
 0x1ac   : > { %4075 = vmatpush3.msra.mxu0 %v4527_v4  ;;  %4076 = vmatprep.mubr.msk.f32.mxu0 %vm4416_vm1, %v4415_v3 }
 0x1ad   : > { %4079 = vmatprep.subr.mxu0 %v4415_v3 }
 0x1ae   : > { %v3024_v24 = vld [vmem:[#allocation3] sm:$0xff] }
 0x1af   : > { %4072 = vmatmul.mubr.msk.f32.vlgmr.msra.gmra.mrb[6].mxu1 %vm437_vm0, %v2627_v39  ;;  %4077 = vmatmul.mubr.msk.f32.vlgmr.msra.gmra.mrb[8].mxu0 %vm437_vm0, %v2714_v38  ;;  %v3032_v27 = vcombine.low %v3024_v24, %v3024_v24  ;;  %v3237_v38 = vld [vmem:[%s4964_s8] sm:$0xf] }
 0x1b0   : > { %4080 = vmatpush3.msra.mxu0 %v4541_v7  ;;  %4081 = vmatprep.mubr.msk.f32.mxu0 %vm4416_vm1, %v4415_v3 }
 0x1b1   : > { %4084 = vmatprep.subr.mxu0 %v4415_v3  ;;  %3311 = vmatprep.mubr.f32.mxu1 %v4415_v3 }
 0x1b7   : > { %4082 = vmatmul.mubr.msk.f32.vlgmr.msra.gmra.mrb[8].mxu0 %vm437_vm0, %v2790_v40 }
 0x1b8   : > { %4085 = vmatpush3.msra.mxu0 %v4551_v11  ;;  %4086 = vmatprep.mubr.msk.f32.mxu0 %vm4416_vm1, %v4415_v3 }
 0x1b9   : > { %4089 = vmatprep.subr.mxu0 %v4415_v3 }
 0x1bf   : > { %4087 = vmatmul.mubr.msk.f32.vlgmr.msra.gmra.mrb[8].mxu0 %vm437_vm0, %v2866_v41 }
 0x1c0   : > { %4090 = vmatpush3.msra.mxu0 %v4561_v12  ;;  %4091 = vmatprep.mubr.msk.f32.mxu0 %vm4416_vm1, %v4415_v3 }
 0x1c1   : > { %4144 = vmatprep.subr.bf16.mxu0 %v4438_v34 }
 0x1c7   : > { %4092 = vmatmul.mubr.msk.f32.vlgmr.msra.gmra.mrb[8].mxu0 %vm437_vm0, %v2942_v42  ;;  %vm2395_vm0 = vcmask 863792  }
 0x1c8   : > { %4112 = vmatprep.mubr.msk.f32.mxu0 %vm4416_vm1, %v4415_v3 }
 0x1d3   : > { %v831_v46 = vpop.f32.mrb[0].mxu1 }
 0x1d4   : > { %v4170_v47 = vadd.f32 %v831_v46, %v532_v45  ;;  %v3953_v48 = vpop.f32.mrb[1].mxu1 }
 0x1d6   : > { %837 = vrot.lane.b32.xlu1 %v4170_v47, %s4425_s12 }
 0x246   : > { %v1141_v52 = vpop.f32.mrb[2].mxu0 }
 0x247   : > { %v4171_v53 = vadd.f32 %v1141_v52, %v532_v45  ;;  %v3973_v54 = vpop.f32.mrb[3].mxu0 }
 0x248   : > { %v838_v55 = vpop.permute.xlu1 %837 }
 0x249   : > { %841 = vst.msk [vmem:[#allocation2] sm:$0xf] %vm840_vm7, %v838_v55  ;;  %1147 = vrot.lane.b32.xlu0 %v4171_v53, %s4426_s15  ;;  %vm2710_vm7 = vmor %vm2709_vm4, %vm2708_vm2  ;;  %vm3230_vm2 = vcmask 736256   ;;  %vm3243_vm4 = vcmask 588800  }
 0x24a   : > { %v1451_v56 = vpop.f32.mrb[2].mxu1 }
 0x24b   : > { %v4172_v57 = vadd.f32 %v1451_v56, %v532_v45  ;;  %v3993_v58 = vpop.f32.mrb[3].mxu1 }
 0x24d   : > { %1457 = vrot.lane.b32.xlu1 %v4172_v57, %s4427_s16 }
 0x262   : > { %v1761_v59 = vpop.f32.mrb[4].mxu0 }
 0x263   : > { %v4173_v60 = vadd.f32 %v1761_v59, %v532_v45  ;;  %v4013_v61 = vpop.f32.mrb[5].mxu0 }
 0x265   : > { %1767 = vrot.lane.b32.xlu1 %v4173_v60, %s4428_s19 }
 0x266   : > { %v2076_v62 = vpop.f32.mrb[4].mxu1 }
 0x267   : > { %v4174_v63 = vadd.f32 %v2076_v62, %v532_v45  ;;  %v4033_v0 = vpop.f32.mrb[5].mxu1 }
 0x269   : > { %2082 = vrot.lane.b32.xlu0 %v4174_v63, %s4429_s20 }
 0x27e   : > { %v2386_v1 = vpop.f32.mrb[6].mxu0 }
 0x27f   : > { %v4175_v2 = vadd.f32 %v2386_v1, %v532_v45  ;;  %v4053_v4 = vpop.f32.mrb[7].mxu0 }
 0x281   : > { %2392 = vrot.lane.b32.xlu0 %v4175_v2, %s4430_s21 }
 0x282   : > { %v2696_v5 = vpop.f32.mrb[6].mxu1 }
 0x283   : > { %v4176_v6 = vadd.f32 %v2696_v5, %v532_v45  ;;  %v4073_v7 = vpop.f32.mrb[7].mxu1 }
 0x285   : > { %2702 = vrot.lane.b32.xlu1 %v4176_v6, %s4431_s22  ;;  %s4440_s22 = smov 19  }
 0x289   : > { %420 = vrot.lane.b32.xlu1 %v415_v8, %s4425_s12 }
 0x29a   : > { %v3011_v9 = vpop.f32.mrb[8].mxu0 }
 0x29b   : > { %v4177_v10 = vadd.f32 %v3011_v9, %v532_v45  ;;  %v4093_v11 = vpop.f32.mrb[9].mxu0 }
 0x29d   : > { %3017 = vrot.lane.b32.xlu1 %v4177_v10, %s4432_s23 }
 0x2bb   : > { %v1148_v12 = vpop.permute.xlu0 %1147 }
 0x2bc   : > { %1151 = vst.msk [vmem:[#allocation2] sm:$0xf] %vm1150_vm9, %v1148_v12  ;;  %vm3020_vm9 = vcmask 404592  }
 0x2bf   : > { %v1458_v13 = vpop.permute.xlu1 %1457 }
 0x2c0   : > { %1461 = vst.msk [vmem:[#allocation2] sm:$0xf] %vm1460_vm10, %v1458_v13  ;;  %vm3042_vm10 = vcmask 1039360  }
 0x2d7   : > { %v1768_v14 = vpop.permute.xlu1 %1767 }
 0x2d8   : > { %v1769_v15 = vrot.slane %v1768_v14, 4 }
 0x2da   : > { %v1771_v16 = vsel %vm1770_vm13, %v1769_v15, %v1768_v14 }
 0x2db   : > { %1776 = vst.msk [vmem:[#allocation2] sm:$0xff] %vm1775_vm14, %v1771_v16  ;;  %v2083_v17 = vpop.permute.xlu0 %2082  ;;  %vm3133_vm14 = vcmask 883712  }
 0x2dc   : > { %2086 = vst.msk [vmem:[#allocation2 + $0x4] sm:$0xf] %vm2085_vm15, %v2083_v17  ;;  %vm3156_vm15 = vcmask 752640  }
 0x2f3   : > { %v2393_v18 = vpop.permute.xlu0 %2392 }
 0x2f4   : > { %2396 = vst.msk [vmem:[#allocation2 + $0x4] sm:$0xf] %vm2395_vm0, %v2393_v18  ;;  %vm3179_vm0 = vcmask 744448  }
 0x2f7   : > { %v2703_v19 = vpop.permute.xlu1 %2702 }
 0x2f8   : > { %v2704_v20 = vrot.slane %v2703_v19, 4 }
 0x2fa   : > { %v2706_v21 = vsel %vm2705_vm6, %v2704_v20, %v2703_v19  ;;  %vm410_vm6 = vcmask 150528  }
 0x2fb   : > { %2711 = vst.msk [vmem:[#allocation2 + $0x4] sm:$0xff] %vm2710_vm7, %v2706_v21  ;;  %v421_v22 = vpop.permute.xlu1 %420  ;;  %vm412_vm7 = vcmask 1043864  }
 0x2fc   : > { %v425_v23 = vsel %vm423_vm3, %v422_v50, %v421_v22  ;;  %vm3196_vm3 = vcmask 1043456   ;;  %411 = vst.msk [vmem:[#allocation4] sm:$0xf] %vm410_vm6, %v4415_v3 }
 0x2fd   : > { %433 = vst.msk [vmem:[#allocation3 + $0x8] sm:$0xf] %vm432_vm8, %v425_v23  ;;  %vm3420_vm8 = vcmask 154624  }
 0x2fe   : > { %413 = vst.msk [vmem:[#allocation4 + $0x8] sm:$0xf] %vm412_vm7, %v4415_v3 }
 0x302   : > { %v3022_v28 = vld [vmem:[#allocation2] sm:$0xff] }
 0x303   : > { %v4292_v29 = vpack.i.bf16 %v3032_v27, %v3022_v28  ;;  %v3028_v31 = vcombine.high %v3022_v28, %v3022_v28  ;;  %v4776_v37 = vsel %vm3196_vm3, %v3022_v28, %v3032_v27 }
 0x304   : > { %v4402_v25 = vld [vmem:[#allocation3 + $0x8] ss:$0 sps:$4 sm:$0xff]  }
 0x305   : > { %v4267_v26 = vpack.i.bf16 %v4402_v25, %v3024_v24  ;;  %v4766_v35 = vsel %vm3196_vm3, %v3028_v31, %v3024_v24 }
 0x307   : > { %4268 = vrot.lane.b32.xlu0 %v4267_v26, %s4428_s19  ;;  %4263 = vrot.lane.b32.xlu1 %v4267_v26, %s4433_s24 }
 0x30b   : > { %4273 = vrot.lane.b32.xlu0 %v4267_v26, %s4434_s25  ;;  %4293 = vrot.lane.b32.xlu1 %v4292_v29, %s4428_s19 }
 0x30f   : > { %v3018_v30 = vpop.permute.xlu1 %3017  ;;  %4278 = vrot.lane.b32.xlu0 %v4267_v26, %s4435_s26  ;;  %4303 = vrot.lane.b32.xlu1 %v4292_v29, %s4435_s26 }
 0x310   : > { %3021 = vst.msk [vmem:[#allocation2 + $0x8] sm:$0xf] %vm3020_vm9, %v3018_v30 }
 0x313   : > { %4283 = vrot.lane.b32.xlu0 %v4267_v26, %s4436_s28  ;;  %4328 = vrot.lane.b32.xlu1 %v4292_v29, %s4437_s29 }
 0x317   : > { %v3023_v32 = vld [vmem:[#allocation2 + $0x8] sm:$0xf]  ;;  %4288 = vrot.lane.b32.xlu0 %v4292_v29, %s4433_s24 }
 0x318   : > { %v4337_v33 = vpack.i.bf16 %v3023_v32, %v3028_v31  ;;  %v4771_v36 = vsel %vm3196_vm3, %v3023_v32, %v4402_v25 }
 0x31a   : > { %4338 = vrot.lane.b32.xlu1 %v4337_v33, %s4428_s19 }
 0x31b   : > { %4298 = vrot.lane.b32.xlu0 %v4292_v29, %s4434_s25 }
 0x31e   : > { %4343 = vrot.lane.b32.xlu1 %v4337_v33, %s4434_s25 }
 0x31f   : > { %4308 = vrot.lane.b32.xlu0 %v4337_v33, %s4433_s24 }
 0x322   : > { %4348 = vrot.lane.b32.xlu1 %v4337_v33, %s4435_s26 }
 0x323   : > { %4313 = vrot.lane.b32.xlu0 %v4292_v29, %s4436_s28 }
 0x326   : > { %4353 = vrot.lane.b32.xlu1 %v4337_v33, %s4436_s28 }
 0x327   : > { %4318 = vrot.lane.b32.xlu0 %v4267_v26, %s4437_s29 }
 0x32a   : > { %4358 = vrot.lane.b32.xlu1 %v4337_v33, %s4437_s29 }
 0x32b   : > { %4323 = vrot.lane.b32.xlu0 %v4267_v26, %s4439_s30 }
 0x32e   : > { %4363 = vrot.lane.b32.xlu1 %v4337_v33, %s4439_s30 }
 0x32f   : > { %4333 = vrot.lane.b32.xlu0 %v4292_v29, %s4439_s30 }
 0x332   : > { %3226 = vrot.lane.b32.xlu1 %v4766_v35, %s4427_s16 }
 0x333   : > { %3228 = vrot.lane.b32.xlu0 %v4771_v36, %s4427_s16 }
 0x336   : > { %3224 = vrot.lane.b32.xlu1 %v4776_v37, %s4427_s16 }
 0x337   : > { %3240 = vperm.xlu0 %4261, %v3237_v38  }
 0x379   : > { %v4269_v39 = vpop.permute.xlu0 %4268  ;;  %v4264_v40 = vpop.permute.xlu1 %4263 }
 0x37a   : > { %v4271_v48 = vunpack.i.h.bf16 %v4269_v39  ;;  %v4270_v49 = vunpack.i.l.bf16 %v4269_v39  ;;  %v4266_v50 = vunpack.i.h.bf16 %v4264_v40  ;;  %v4265_v51 = vunpack.i.l.bf16 %v4264_v40 }
 0x37c   : > { %v3077_v63 = vsel %vm1770_vm13, %v4270_v49, %v4271_v48  ;;  %v3055_v0 = vsel %vm3042_vm10, %v4265_v51, %v4266_v50 }
 0x37d   : > { %v4783_v41 = vpop.permute.xlu0 %4273  ;;  %v4294_v42 = vpop.permute.xlu1 %4293 }
 0x37e   : > { %v4276_v52 = vunpack.i.h.bf16 %v4783_v41  ;;  %v4275_v53 = vunpack.i.l.bf16 %v4783_v41  ;;  %v4296_v54 = vunpack.i.h.bf16 %v4294_v42  ;;  %v4295_v5 = vunpack.i.l.bf16 %v4294_v42 }
 0x380   : > { %v3100_v2 = vsel %vm3087_vm11, %v4275_v53, %v4276_v52  ;;  %v3076_v4 = vsel %vm1770_vm13, %v4296_v54, %v4270_v49 }
 0x381   : > { %v4785_v43 = vpop.permute.xlu0 %4278  ;;  %v4787_v44 = vpop.permute.xlu1 %4303 }
 0x382   : > { %v4281_v56 = vunpack.i.h.bf16 %v4785_v43  ;;  %v4280_v57 = vunpack.i.l.bf16 %v4785_v43  ;;  %v4306_v6 = vunpack.i.h.bf16 %v4787_v44  ;;  %v4305_v9 = vunpack.i.l.bf16 %v4787_v44 }
 0x384   : > { %v3123_v8 = vsel %vm3110_vm12, %v4280_v57, %v4281_v56 }
 0x385   : > { %v4789_v45 = vpop.permute.xlu0 %4283  ;;  %v4791_v46 = vpop.permute.xlu1 %4328 }
 0x386   : > { %v4286_v58 = vunpack.i.h.bf16 %v4789_v45  ;;  %v4285_v59 = vunpack.i.l.bf16 %v4789_v45  ;;  %v3122_v45 = vsel %vm3110_vm12, %v4306_v6, %v4280_v57 }
 0x388   : > { %v3146_v12 = vsel %vm3133_vm14, %v4285_v59, %v4286_v58 }
 0x389   : > { %v4289_v47 = vpop.permute.xlu0 %4288 }
 0x38a   : > { %v4291_v1 = vunpack.i.h.bf16 %v4289_v47  ;;  %v4290_v17 = vunpack.i.l.bf16 %v4289_v47 }
 0x38c   : > { %v4339_v55 = vpop.permute.xlu1 %4338  ;;  %v3054_v18 = vsel %vm3042_vm10, %v4291_v1, %v4265_v51 }
 0x38d   : > { %v4341_v60 = vunpack.i.h.bf16 %v4339_v55  ;;  %v4340_v61 = vunpack.i.l.bf16 %v4339_v55  ;;  %v4299_v62 = vpop.permute.xlu0 %4298 }
 0x38e   : > { %v4301_v14 = vunpack.i.h.bf16 %v4299_v62  ;;  %v4300_v15 = vunpack.i.l.bf16 %v4299_v62 }
 0x38f   : > { %v3066_v13 = vsel %vm1770_vm13, %v4340_v61, %v4341_v60  ;;  %v3205_v19 = vsel %vm3196_vm3, %v4341_v60, %v4271_v48  ;;  %v3065_v21 = vsel %vm1770_vm13, %v4295_v5, %v4340_v61 }
 0x390   : > { %v4344_v7 = vpop.permute.xlu1 %4343  ;;  %v3204_v29 = vsel %vm3196_vm3, %v3066_v13, %v3077_v63  ;;  %v3099_v30 = vsel %vm3087_vm11, %v4301_v14, %v4275_v53  ;;  %v3203_v41 = vsel %vm3196_vm3, %v3065_v21, %v3076_v4 }
 0x391   : > { %v4346_v10 = vunpack.i.h.bf16 %v4344_v7  ;;  %v4345_v11 = vunpack.i.l.bf16 %v4344_v7  ;;  %v4309_v16 = vpop.permute.xlu0 %4308 }
 0x392   : > { %v4311_v20 = vunpack.i.h.bf16 %v4309_v16  ;;  %v4310_v24 = vunpack.i.l.bf16 %v4309_v16 }
 0x393   : > { %v3088_v22 = vsel %vm3087_vm11, %v4300_v15, %v4345_v11  ;;  %v3089_v23 = vsel %vm3087_vm11, %v4345_v11, %v4346_v10  ;;  %v3208_v39 = vsel %vm3196_vm3, %v4346_v10, %v4276_v52 }
 0x394   : > { %v4349_v25 = vpop.permute.xlu1 %4348  ;;  %v3202_v26 = vsel %vm3196_vm3, %v4311_v20, %v4266_v50  ;;  %v3043_v31 = vsel %vm3042_vm10, %v4290_v17, %v4310_v24  ;;  %v3044_v32 = vsel %vm3042_vm10, %v4310_v24, %v4311_v20  ;;  %v3207_v40 = vsel %vm3196_vm3, %v3089_v23, %v3100_v2 }
 0x395   : > { %v4351_v27 = vunpack.i.h.bf16 %v4349_v25  ;;  %v4350_v28 = vunpack.i.l.bf16 %v4349_v25  ;;  %v4145_v33 = vpack.c.bf16 %v3202_v26, %v4771_v36  ;;  %v4314_v38 = vpop.permute.xlu0 %4313  ;;  %v3206_v42 = vsel %vm3196_vm3, %v3088_v22, %v3099_v30 }
 0x396   : > { %v4316_v48 = vunpack.i.h.bf16 %v4314_v38  ;;  %v3201_v50 = vsel %vm3196_vm3, %v3044_v32, %v3055_v0  ;;  %v3200_v51 = vsel %vm3196_vm3, %v3043_v31, %v3054_v18  ;;  %v4315_v53 = vunpack.i.l.bf16 %v4314_v38 }
 0x397   : > { %v3112_v47 = vsel %vm3110_vm12, %v4350_v28, %v4351_v27  ;;  %4146 = vmatpush3.bf16.msra.mxu0 %v4145_v33  ;;  %v4128_v52 = vpack.c.bf16 %v3201_v50, %v4766_v35  ;;  %v4148_v55 = vpack.c.bf16 %v3208_v39, %v3205_v19  ;;  %v4130_v61 = vpack.c.bf16 %v3200_v51, %v4776_v37 }
 0x398   : > { %v4354_v49 = vpop.permute.xlu1 %4353  ;;  %4147 = vmatprep.subr.bf16.mxu0 %v4438_v34  ;;  %v4132_v62 = vpack.c.bf16 %v3207_v40, %v3204_v29  ;;  %v4134_v63 = vpack.c.bf16 %v3206_v42, %v3203_v41  ;;  %v3211_v1 = vsel %vm3196_vm3, %v4351_v27, %v4281_v56  ;;  %v3111_v4 = vsel %vm3110_vm12, %v4305_v9, %v4350_v28 }
 0x399   : > { %v4356_v36 = vunpack.i.h.bf16 %v4354_v49  ;;  %v4355_v54 = vunpack.i.l.bf16 %v4354_v49  ;;  %v4319_v60 = vpop.permute.xlu0 %4318  ;;  %4129 = vmatprep.subr.bf16.mxu1 %v4128_v52  ;;  %v3210_v37 = vsel %vm3196_vm3, %v3112_v47, %v3123_v8  ;;  %v3145_v56 = vsel %vm3133_vm14, %v4316_v48, %v4285_v59  ;;  %v3236_v48 = vld [vmem:[%s4963_s7] sm:$0xf] }
 0x39a   : > { %4131 = vmatpush1.bf16.msra.mxu1 %v4130_v61  ;;  %v4321_v14 = vunpack.i.h.bf16 %v4319_v60  ;;  %v4320_v9 = vunpack.i.l.bf16 %v4319_v60  ;;  %v4331_v8 = vunpack.i.h.bf16 %v4791_v46  ;;  %v3209_v19 = vsel %vm3196_vm3, %v3111_v4, %v3122_v45  ;;  %v3391_v52 = vld [vmem:[%s4962_s6] sm:$0x7] }
 0x39b   : > { %v3214_v0 = vsel %vm3196_vm3, %v4356_v36, %v4286_v58  ;;  %v3134_v2 = vsel %vm3133_vm14, %v4315_v53, %v4355_v54  ;;  %v3135_v35 = vsel %vm3133_vm14, %v4355_v54, %v4356_v36  ;;  %4149 = vmatpush3.bf16.msra.mxu0 %v4148_v55  ;;  %4133 = vmatprep.subr.bf16.mxu1 %v4132_v62  ;;  %v3393_v53 = vlaneseq }
 0x39c   : > { %v4359_v5 = vpop.permute.xlu1 %4358  ;;  %v3213_v7 = vsel %vm3196_vm3, %v3135_v35, %v3146_v12  ;;  %4150 = vmatprep.subr.bf16.mxu0 %v4438_v34  ;;  %v4151_v13 = vpack.c.bf16 %v3214_v0, %v3211_v1  ;;  %v3212_v16 = vsel %vm3196_vm3, %v3134_v2, %v3145_v56  ;;  %v4330_v12 = vunpack.i.l.bf16 %v4791_v46 }
 0x39d   : > { %v4361_v10 = vunpack.i.h.bf16 %v4359_v5  ;;  %v4360_v58 = vunpack.i.l.bf16 %v4359_v5  ;;  %v4136_v11 = vpack.c.bf16 %v3213_v7, %v3210_v37  ;;  %v4324_v15 = vpop.permute.xlu0 %4323  ;;  %v4138_v44 = vpack.c.bf16 %v3212_v16, %v3209_v19 }
 0x39e   : > { %v4326_v59 = vunpack.i.h.bf16 %v4324_v15  ;;  %v4325_v17 = vunpack.i.l.bf16 %v4324_v15  ;;  %4135 = vmatpush1.bf16.msra.mxu1 %v4134_v63  ;;  %v3169_v57 = vsel %vm3156_vm15, %v4320_v9, %v4321_v14  ;;  %v3168_v32 = vsel %vm3156_vm15, %v4331_v8, %v4320_v9 }
 0x39f   : > { %4152 = vmatpush3.bf16.msra.mxu0 %v4151_v13  ;;  %v3158_v20 = vsel %vm3156_vm15, %v4360_v58, %v4361_v10  ;;  %4137 = vmatprep.subr.bf16.mxu1 %v4136_v11  ;;  %v3217_v6 = vsel %vm3196_vm3, %v4361_v10, %v4321_v14  ;;  %v3157_v46 = vsel %vm3156_vm15, %v4330_v12, %v4360_v58  ;;  %v3394_v36 = vshrl.u32 %v3393_v53, 7 }
 0x3a0   : > { %v4364_v18 = vpop.permute.xlu1 %4363  ;;  %4153 = vmatprep.subr.bf16.mxu0 %v4438_v34  ;;  %v3192_v22 = vsel %vm3179_vm0, %v4325_v17, %v4326_v59  ;;  %v3216_v30 = vsel %vm3196_vm3, %v3158_v20, %v3169_v57  ;;  %v3215_v41 = vsel %vm3196_vm3, %v3157_v46, %v3168_v32 }
 0x3a1   : > { %v4366_v43 = vunpack.i.h.bf16 %v4364_v18  ;;  %v4365_v21 = vunpack.i.l.bf16 %v4364_v18  ;;  %v4334_v23 = vpop.permute.xlu0 %4333  ;;  %v3403_v54 = vsub.s32 2, %v3394_v36  ;;  %v3395_v61 = vsub.s32 0, %v3394_v36 }
 0x3a2   : > { %v4336_v26 = vunpack.i.h.bf16 %v4334_v23  ;;  %v4335_v27 = vunpack.i.l.bf16 %v4334_v23  ;;  %4139 = vmatpush1.bf16.msra.mxu1 %v4138_v44  ;;  %v3399_v1 = vsub.s32 1, %v3394_v36  ;;  %v3536_v44 = vld [vmem:[%s4966_s10] sm:$0xf] }
 0x3a3   : > { %v3220_v24 = vsel %vm3196_vm3, %v4366_v43, %v4326_v59  ;;  %v3181_v25 = vsel %vm3179_vm0, %v4365_v21, %v4366_v43  ;;  %v3404_v63 = vrot.slane %v3391_v52, %v3403_v54  ;;  %v3396_v5 = vrot.slane %v3391_v52, %v3395_v61 }
 0x3a4   : > { %v4154_v28 = vpack.c.bf16 %v3220_v24, %v3217_v6  ;;  %v3227_v29 = vpop.permute.xlu1 %3226  ;;  %v3219_v31 = vsel %vm3196_vm3, %v3181_v25, %v3192_v22  ;;  %v3180_v33 = vsel %vm3179_vm0, %v4335_v27, %v4365_v21  ;;  %v3191_v38 = vsel %vm3179_vm0, %v4336_v26, %v4325_v17 }
 0x3a5   : > { %v4140_v39 = vpack.c.bf16 %v3219_v31, %v3216_v30  ;;  %v3229_v40 = vpop.permute.xlu0 %3228  ;;  %v3218_v42 = vsel %vm3196_vm3, %v3180_v33, %v3191_v38  ;;  %v3400_v10 = vrot.slane %v3391_v52, %v3399_v1 }
 0x3a6   : > { %4155 = vmatpush3.bf16.msra.mxu0 %v4154_v28  ;;  %v4142_v47 = vpack.c.bf16 %v3218_v42, %v3215_v41  ;;  %v3232_v50 = vsel %vm3230_vm2, %v3227_v29, %v3229_v40 }
 0x3a7   : > { %4141 = vmatprep.subr.bf16.mxu1 %v4140_v39  ;;  %4110 = vmatprep.subr.mxu0 %v4415_v3 }
 0x3a8   : > { %v3225_v49 = vpop.permute.xlu1 %3224  ;;  %4143 = vmatpush1.bf16.msra.mxu1 %v4142_v47 }
 0x3a9   : > { %3263 = vmatprep.subr.mxu1 %v3232_v50  ;;  %v3231_v51 = vsel %vm3230_vm2, %v3225_v49, %v3227_v29 }
 0x3aa   : > { %4111 = vmatpush3.msra.mxu0 %v3229_v40 }
 0x3ab   : > { %4113 = vmatmul.mubr.msk.f32.vlgmr.msra.gmra.mrb[10].mxu0 %vm3243_vm4, %v3236_v48  ;;  %4164 = vmatprep.subr.bf16.mxu0 %v4438_v34 }
 0x3ac   : > { %4125 = vmatprep.mubr.msk.f32.mxu0 %vm4416_vm1, %v4415_v3  ;;  %3264 = vmatpush1.msra.mxu1 %v3231_v51  ;;  %vm3425_vm1 = vcmask 1043608  }
 0x3ad   : > { %3837 = vmatmul.mubr.msk.f32.vlgmr.msra.gmra.mrb[8].mxu1 %vm3243_vm4, %v3236_v48  ;;  %vm3426_vm9 = vmor %vm429_vm5, %vm3425_vm1  ;;  %vm3428_vm4 = vcmask 412672   ;;  %vm3542_vm5 = vcmask 293888  }
 0x3ae   : > { %3616 = vmatprep.mubr.f32.mxu1 %v4415_v3 }
 0x3b6   : > { %v3241_v55 = vpop.permute.xlu0 %3240 }
 0x47e   : > { %v3384_v60 = vpop.f32.mrb[10].mxu0 }
 0x47f   : > { %v3385_v62 = vadd.f32 %v3384_v60, %v3241_v55  ;;  %v4114_v0 = vpop.f32.mrb[11].mxu0 }
 0x480   : > { %v3313_v35 = vpop.f32.mrb[8].mxu1 }
 0x481   : > { %v3390_v2 = vmax.f32 %v3385_v62, 0.0  ;;  %v3314_v4 = vadd.f32 %v3313_v35, %v3241_v55  ;;  %v3315_v37 = vpop.f32.mrb[9].mxu1 }
 0x482   : > { %v3316_v56 = vadd.f32 %v3315_v37, %v3241_v55 }
 0x483   : > { %v3410_v7 = vmul.f32 %v3404_v63, %v3390_v2  ;;  %v3388_v58 = vmax.f32 %v3314_v4, 0.0 }
 0x484   : > { %v3389_v11 = vmax.f32 %v3316_v56, 0.0 }
 0x485   : > { %3417 = vrot.lane.b32.xlu0 %v3410_v7, %s4440_s22  ;;  %v3408_v13 = vmul.f32 %v3396_v5, %v3388_v58 }
 0x486   : > { %v3409_v14 = vmul.f32 %v3400_v10, %v3389_v11 }
 0x488   : > { %v3414_v9 = vcombine.low %v3408_v13, %v3409_v14 }
 0x48a   : > { %3415 = vrot.lane.b32.xlu1 %v3414_v9, %s4440_s22 }
 0x4f7   : > { %v3418_v45 = vpop.permute.xlu0 %3417 }
 0x4fc   : > { %v3416_v15 = vpop.permute.xlu1 %3415 }
 0x4fd   : > { %v3419_v16 = vrot.slane %v3416_v15, 4 }
 0x4ff   : > { %v3421_v59 = vsel %vm3420_vm8, %v3419_v16, %v3416_v15  ;;  %v3422_v8 = vsel %vm3420_vm8, %v3419_v16, %v3418_v45 }
 0x500   : > { %3427 = vst.msk [vmem:[#allocation4] sm:$0xff] %vm3426_vm9, %v3421_v59 }
 0x501   : > { %3429 = vst.msk [vmem:[#allocation4 + $0x8] sm:$0xf] %vm3428_vm4, %v3422_v8 }
 0x507   : > { %v3430_v12 = vld [vmem:[#allocation4] sm:$0xff] }
 0x508   : > { %3449 = vrot.lane.b32.xlu1 %v3430_v12, %s4428_s19  ;;  %v3434_v17 = vcombine.high %v3430_v12, %v3430_v12  ;;  %v3431_v18 = vld [vmem:[#allocation4 + $0x8] sm:$0xf]  ;;  %v3436_v20 = vcombine.low %v3430_v12, %v3430_v12 }
 0x509   : > { %v3437_v43 = vcombine.low %v3431_v18, %v3431_v18 }
 0x50a   : > { %v4372_v19 = vpack.i.bf16 %v3431_v18, %v3434_v17 }
 0x50b   : > { %v4367_v21 = vpack.i.bf16 %v3437_v43, %v3430_v12 }
 0x50c   : > { %3471 = vrot.lane.b32.xlu1 %v3430_v12, %s4435_s26  ;;  %4373 = vrot.lane.b32.xlu0 %v4372_v19, %s4428_s19 }
 0x510   : > { %3493 = vrot.lane.b32.xlu1 %v3430_v12, %s4437_s29  ;;  %3438 = vrot.lane.b32.xlu0 %v3436_v20, %s4433_s24 }
 0x514   : > { %4368 = vrot.lane.b32.xlu1 %v4367_v21, %s4433_s24  ;;  %3460 = vrot.lane.b32.xlu0 %v3436_v20, %s4434_s25 }
 0x518   : > { %4378 = vrot.lane.b32.xlu1 %v4367_v21, %s4434_s25  ;;  %4388 = vrot.lane.b32.xlu0 %v4367_v21, %s4436_s28 }
 0x51c   : > { %4383 = vrot.lane.b32.xlu1 %v4372_v19, %s4435_s26  ;;  %4398 = vrot.lane.b32.xlu0 %v4367_v21, %s4439_s30 }
 0x520   : > { %4393 = vrot.lane.b32.xlu1 %v4372_v19, %s4437_s29  ;;  %3482 = vrot.lane.b32.xlu0 %v3436_v20, %s4436_s28  ;;  %s403_s28 = scalar_lea.vmem %s4967_s11, %s4226_s27 }
 0x524   : > { %3517 = vrot.lane.b32.xlu1 %v3434_v17, %s4427_s16  ;;  %3504 = vrot.lane.b32.xlu0 %v3436_v20, %s4439_s30 }
 0x528   : > { %3515 = vrot.lane.b32.xlu1 %v3430_v12, %s4427_s16  ;;  %3519 = vrot.lane.b32.xlu0 %v3431_v18, %s4427_s16 }
 0x52c   : > { %3539 = vperm.xlu0 %4261, %v3536_v44   ;;  %v3535_v44 = vld [vmem:[%s4965_s9] sm:$0xf] }
 0x57a   : > { %v3450_v57 = vpop.permute.xlu1 %3449 }
 0x57e   : > { %v3472_v6 = vpop.permute.xlu1 %3471  ;;  %v4374_v46 = vpop.permute.xlu0 %4373 }
 0x57f   : > { %v4376_v26 = vunpack.i.h.bf16 %v4374_v46  ;;  %v4375_v27 = vunpack.i.l.bf16 %v4374_v46 }
 0x581   : > { %v3455_v38 = vsel %vm1770_vm13, %v3450_v57, %v4375_v27  ;;  %v3456_v39 = vsel %vm1770_vm13, %v4375_v27, %v4376_v26  ;;  %vm3701_vm13 = vcmask 257024  }
 0x582   : > { %v3494_v22 = vpop.permute.xlu1 %3493  ;;  %v3439_v23 = vpop.permute.xlu0 %3438 }
 0x586   : > { %v4369_v24 = vpop.permute.xlu1 %4368  ;;  %v3461_v25 = vpop.permute.xlu0 %3460 }
 0x587   : > { %v4371_v28 = vunpack.i.h.bf16 %v4369_v24  ;;  %v4370_v29 = vunpack.i.l.bf16 %v4369_v24 }
 0x589   : > { %v3444_v40 = vsel %vm3042_vm10, %v3439_v23, %v4370_v29  ;;  %v3445_v41 = vsel %vm3042_vm10, %v4370_v29, %v4371_v28  ;;  %v3525_v42 = vsel %vm3196_vm3, %v3431_v18, %v4371_v28 }
 0x58a   : > { %v4379_v30 = vpop.permute.xlu1 %4378  ;;  %v4389_v31 = vpop.permute.xlu0 %4388  ;;  %v3524_v60 = vsel %vm3196_vm3, %v3434_v17, %v3445_v41  ;;  %v3523_v61 = vsel %vm3196_vm3, %v3430_v12, %v3444_v40 }
 0x58b   : > { %v4381_v32 = vunpack.i.h.bf16 %v4379_v30  ;;  %v4380_v33 = vunpack.i.l.bf16 %v4379_v30  ;;  %v4391_v62 = vunpack.i.h.bf16 %v4389_v31  ;;  %v4390_v63 = vunpack.i.l.bf16 %v4389_v31 }
 0x58d   : > { %v3466_v47 = vsel %vm3087_vm11, %v3461_v25, %v4380_v33  ;;  %v3467_v48 = vsel %vm3087_vm11, %v4380_v33, %v4381_v32  ;;  %v3528_v49 = vsel %vm3196_vm3, %v4376_v26, %v4381_v32  ;;  %v3489_v10 = vsel %vm3133_vm14, %v4390_v63, %v4391_v62 }
 0x58e   : > { %v4165_v50 = vpack.c.bf16 %v3528_v49, %v3525_v42  ;;  %v4384_v51 = vpop.permute.xlu1 %4383  ;;  %v4399_v53 = vpop.permute.xlu0 %4398  ;;  %v3527_v36 = vsel %vm3196_vm3, %v3456_v39, %v3467_v48  ;;  %v3526_v54 = vsel %vm3196_vm3, %v3455_v38, %v3466_v47 }
 0x58f   : > { %v4386_v52 = vunpack.i.h.bf16 %v4384_v51  ;;  %v4385_v55 = vunpack.i.l.bf16 %v4384_v51  ;;  %v4156_v1 = vpack.c.bf16 %v3527_v36, %v3524_v60  ;;  %v4158_v0 = vpack.c.bf16 %v3526_v54, %v3523_v61 }
 0x590   : > { %4166 = vmatpush3.bf16.msra.mxu0 %v4165_v50  ;;  %v4401_v2 = vunpack.i.h.bf16 %v4399_v53  ;;  %v4400_v35 = vunpack.i.l.bf16 %v4399_v53 }
 0x591   : > { %4167 = vmatprep.subr.bf16.mxu0 %v4438_v34  ;;  %4157 = vmatprep.subr.bf16.mxu1 %v4156_v1  ;;  %v3478_v37 = vsel %vm3110_vm12, %v4385_v55, %v4386_v52  ;;  %v3531_v58 = vsel %vm3196_vm3, %v4386_v52, %v4391_v62  ;;  %v3477_v8 = vsel %vm3110_vm12, %v3472_v6, %v4385_v55 }
 0x592   : > { %v4394_v4 = vpop.permute.xlu1 %4393  ;;  %v3483_v5 = vpop.permute.xlu0 %3482  ;;  %4159 = vmatpush1.bf16.msra.mxu1 %v4158_v0  ;;  %v3511_v11 = vsel %vm3179_vm0, %v4400_v35, %v4401_v2  ;;  %v3530_v45 = vsel %vm3196_vm3, %v3478_v37, %v3489_v10 }
 0x593   : > { %v4396_v7 = vunpack.i.h.bf16 %v4394_v4  ;;  %v4395_v56 = vunpack.i.l.bf16 %v4394_v4  ;;  %v3488_v34 = vsel %vm3133_vm14, %v3483_v5, %v4390_v63 }
 0x594   : > { %v3529_v19 = vsel %vm3196_vm3, %v3477_v8, %v3488_v34 }
 0x595   : > { %v3500_v13 = vsel %vm3156_vm15, %v4395_v56, %v4396_v7  ;;  %v3534_v14 = vsel %vm3196_vm3, %v4396_v7, %v4401_v2  ;;  %v3499_v12 = vsel %vm3156_vm15, %v3494_v22, %v4395_v56 }
 0x596   : > { %v4168_v9 = vpack.c.bf16 %v3534_v14, %v3531_v58  ;;  %v3518_v15 = vpop.permute.xlu1 %3517  ;;  %v3505_v16 = vpop.permute.xlu0 %3504  ;;  %v3533_v59 = vsel %vm3196_vm3, %v3500_v13, %v3511_v11 }
 0x597   : > { %v3510_v17 = vsel %vm3179_vm0, %v3505_v16, %v4400_v35  ;;  %v4160_v18 = vpack.c.bf16 %v3533_v59, %v3530_v45 }
 0x598   : > { %v3532_v20 = vsel %vm3196_vm3, %v3499_v12, %v3510_v17  ;;  %4169 = vmatpush3.bf16.msra.mxu0 %v4168_v9 }
 0x599   : > { %v4162_v43 = vpack.c.bf16 %v3532_v20, %v3529_v19  ;;  %4161 = vmatprep.subr.bf16.mxu1 %v4160_v18  ;;  %4123 = vmatprep.subr.mxu0 %v4415_v3 }
 0x59a   : > { %v3520_v21 = vpop.permute.xlu0 %3519  ;;  %v3516_v57 = vpop.permute.xlu1 %3515 }
 0x59b   : > { %v3522_v6 = vsel %vm3230_vm2, %v3518_v15, %v3520_v21  ;;  %4163 = vmatpush1.bf16.msra.mxu1 %v4162_v43  ;;  %v3521_v46 = vsel %vm3230_vm2, %v3516_v57, %v3518_v15 }
 0x59c   : > { %3839 = vmatprep.subr.msk.mxu1 %vm3196_vm3, %v3522_v6  ;;  %4124 = vmatpush3.msk.msra.mxu0 %vm3196_vm3, %v3520_v21 }
 0x59d   : > { %4126 = vmatmul.mubr.msk.f32.vlgmr.msra.gmra.mrb[12].mxu0 %vm3542_vm5, %v3535_v44 }
 0x59f   : > { %3840 = vmatpush1.msk.msra.mxu1 %vm3196_vm3, %v3521_v46 }
 0x5a0   : > { %3841 = vmatmul.mubr.msk.f32.vlgmr.msra.gmra.mrb[10].mxu1 %vm3542_vm5, %v3535_v44 }
 0x5ab   : > { %v3540_v3 = vpop.permute.xlu0 %3539 }
 0x670   : > { %v3689_v22 = vpop.f32.mrb[12].mxu0 }
 0x671   : > { %v3690_v23 = vadd.f32 %v3689_v22, %v3540_v3  ;;  %v4127_v24 = vpop.f32.mrb[13].mxu0 }
 0x673   : > { %v3695_v25 = vmax.f32 %v3690_v23, 0.0  ;;  %v3618_v26 = vpop.f32.mrb[10].mxu1 }
 0x674   : > { %v3619_v27 = vadd.f32 %v3618_v26, %v3540_v3  ;;  %v3620_v28 = vpop.f32.mrb[11].mxu1 }
 0x675   : > { %3702 = vst.msk [vmem:[%s403_s28 + $0x8] sm:$0xf] %vm3701_vm13, %v3695_v25  ;;  %v3621_v29 = vadd.f32 %v3620_v28, %v3540_v3 }
 0x676   : > { %v3693_v30 = vmax.f32 %v3619_v27, 0.0 }
 0x677   : > { %v3694_v31 = vmax.f32 %v3621_v29, 0.0 }
 0x679   : > { %v3698_v32 = vcombine.low %v3693_v30, %v3694_v31 }
 0x67b   : > { %3700 = vst [vmem:[%s403_s28] sm:$0xff] %v3698_v32 }
 0x67c PF: > { %s21_s17 = sadd.s32 1, %s4413_s17  }
 0x67d   : > { %p18_p4 = scmp.ge.s32.totalorder %s21_s17, 4  }
 0x67f   :  { %20 = sbr.rel (!%p18_p4) target bundleno = 1 (0x1), region = 100 }

</bundles_post_ra>
